<compile_context>
chip_gen: v7x
topology: tpu7x:2x2x1
jax: 0.10.0
libtpu: 0.0.40
codegen_flags: <defaults>
</compile_context>

<pallas_src>
import functools

import jax
import jax.numpy as jnp
from jax.experimental import pallas as pl
from jax.experimental.pallas import tpu as pltpu


def _supclu_kernel(lq_ref, lk_ref, q_ref, k_ref, out_ref,
                   m_ref, l_ref, psum_ref, pcnt_ref,
                   *, temperature, base_temperature, batch_size, tile_q, tile_k):
    qi = pl.program_id(0)
    kj = pl.program_id(1)
    nk = pl.num_programs(1)

    @pl.when(kj == 0)
    def _init():
        m_ref[...] = jnp.full((tile_q, 1), -jnp.inf, dtype=jnp.float32)
        l_ref[...] = jnp.zeros((tile_q, 1), dtype=jnp.float32)
        psum_ref[...] = jnp.zeros((tile_q, 1), dtype=jnp.float32)
        pcnt_ref[...] = jnp.zeros((tile_q, 1), dtype=jnp.float32)

    inv_temp = 1.0 / temperature
    # Fold 1/temperature into the small [TQ, D] query tile (f32 elementwise,
    # v5e-safe), then feed the MXU bf16 operands with f32 accumulation.
    q = (q_ref[...].astype(jnp.float32) * inv_temp).astype(jnp.bfloat16)
    k = k_ref[...]                                            # [TK, D] bf16

    # anchor_dot_contrast strip for this (q, k) tile pair: [TQ, TK] f32.
    s = jax.lax.dot_general(
        q, k,
        dimension_numbers=(((1,), (1,)), ((), ())),
        preferred_element_type=jnp.float32,
    )

    # Global row / col indices for self-exclusion and padding masks.
    row_g = qi * tile_q + jax.lax.broadcasted_iota(jnp.int32, (tile_q, 1), 0)
    col_g = kj * tile_k + jax.lax.broadcasted_iota(jnp.int32, (1, tile_k), 1)
    not_self = row_g != col_g                                  # [TQ, TK]
    valid_col = col_g < batch_size                             # [1,  TK]

    # Denominator mask: everything except self and padded columns.
    lmask = jnp.where(not_self & valid_col, 1.0, 0.0)
    # Positive-pair mask built in-kernel from labels (padded labels are unique
    # negatives, so they never match a real label).
    pmask = jnp.where((lq_ref[...] == lk_ref[...]) & not_self, 1.0, 0.0)

    # Online (flash-style) row-max / denominator update.
    m_prev = m_ref[...]
    m_new = jnp.maximum(m_prev, jnp.max(s, axis=1, keepdims=True))
    alpha = jnp.exp(m_prev - m_new)
    p = jnp.exp(s - m_new) * lmask
    l_ref[...] = alpha * l_ref[...] + jnp.sum(p, axis=1, keepdims=True)
    psum_ref[...] += jnp.sum(pmask * s, axis=1, keepdims=True)
    pcnt_ref[...] += jnp.sum(pmask, axis=1, keepdims=True)
    m_ref[...] = m_new

    @pl.when(kj == nk - 1)
    def _finalize():
        cnt = pcnt_ref[...]
        inv_cnt = pl.reciprocal(jnp.maximum(cnt, 1.0), approx=True)
        # mean_log_prob_pos = sum(mask * logits)/cnt - log(sum(exp(logits)*logits_mask))
        #                   = psum/cnt - m - log(l)   (the row max m cancels algebraically)
        mean_log_prob_pos = psum_ref[...] * inv_cnt - m_ref[...] - jnp.log(l_ref[...])
        loss_rows = (-(temperature / base_temperature)) * mean_log_prob_pos
        # Zero padded rows.  Rows with no positives are also zeroed (the PyTorch
        # original would produce NaN for such degenerate rows).
        valid = (row_g < batch_size) & (cnt > 0.0)
        out_ref[...] = jnp.where(valid, loss_rows, 0.0)


def _round_up(x, m):
    return ((x + m - 1) // m) * m


def supclu_loss(features, labels=None, memory_features=None, mem_labels=None,
                mask=None, temperature=0.07, base_temperature=0.07, tile=128):
    """JAX/Pallas equivalent of SupCluLoss.forward (contrast_mode='all')."""
    if memory_features is not None or mem_labels is not None:
        # TODO(synk): memory-bank branch (memory_features/mem_labels) not implemented.
        raise NotImplementedError("memory_features path not implemented")
    B, D = features.shape
    if labels is not None and mask is not None:
        raise ValueError("Cannot define both `labels` and `mask`")
    if labels is None and mask is None:
        # torch.eye mask == "each sample is its own label".
        labels = jnp.arange(B, dtype=jnp.int32)
    elif mask is not None:
        # TODO(synk): arbitrary user-provided [B,B] mask path not kernelized.
        raise NotImplementedError("explicit mask path not implemented; pass labels")
    labels = jnp.asarray(labels).reshape(-1).astype(jnp.int32)
    if labels.shape[0] != B:
        raise ValueError("Num of labels does not match num of features")

    tile = int(tile)                      # 128 works on v5e/v6e/v7x; 256 is fine on v6e/v7x.
    tile_q = tile_k = tile
    B_pad = max(_round_up(B, tile), tile)
    pad = B_pad - B

    feats = features.astype(jnp.float32)
    if pad:
        feats = jnp.pad(feats, ((0, pad), (0, 0)))
        # Unique negative labels for padded rows -> never a positive of anything.
        pad_labels = (jnp.min(labels) - 1) - jnp.arange(pad, dtype=jnp.int32)
        labels = jnp.concatenate([labels, pad_labels])
    feats_bf = feats.astype(jnp.bfloat16)                 # halves HBM/VMEM bytes
    labels_col = labels.reshape(B_pad, 1)
    labels_row = labels.reshape(1, B_pad)

    nq = B_pad // tile_q
    nk = B_pad // tile_k

    kernel = functools.partial(
        _supclu_kernel,
        temperature=float(temperature),
        base_temperature=float(base_temperature),
        batch_size=B,
        tile_q=tile_q,
        tile_k=tile_k,
    )

    per_row = pl.pallas_call(
        kernel,
        out_shape=jax.ShapeDtypeStruct((B_pad, 1), jnp.float32),
        grid_spec=pltpu.PrefetchScalarGridSpec(
            num_scalar_prefetch=0,
            grid=(nq, nk),
            in_specs=[
                pl.BlockSpec((tile_q, 1), lambda qi, kj: (qi, 0)),   # query labels
                pl.BlockSpec((1, tile_k), lambda qi, kj: (0, kj)),   # key labels
                pl.BlockSpec((tile_q, D), lambda qi, kj: (qi, 0)),   # query features
                pl.BlockSpec((tile_k, D), lambda qi, kj: (kj, 0)),   # key features
            ],
            out_specs=pl.BlockSpec((tile_q, 1), lambda qi, kj: (qi, 0)),
            scratch_shapes=[
                pltpu.VMEM((tile_q, 1), jnp.float32),   # running row max m
                pltpu.VMEM((tile_q, 1), jnp.float32),   # running denominator l
                pltpu.VMEM((tile_q, 1), jnp.float32),   # sum(mask * adc)
                pltpu.VMEM((tile_q, 1), jnp.float32),   # positive count
            ],
        ),
        compiler_params=pltpu.CompilerParams(
            dimension_semantics=("parallel", "arbitrary"),
            vmem_limit_bytes=32 * 1024 * 1024,
        ),
    )(labels_col, labels_row, feats_bf, feats_bf)

    # anchor_count == 1 -> mean over the batch (padded rows contribute 0).
    return jnp.sum(per_row) / B


def _reference(features, labels, temperature=0.07, base_temperature=0.07,
               bf16_matmul=True):
    """Pure-JAX reference mirroring the PyTorch forward.

    With bf16_matmul=True the similarity matmul uses the same bf16 operand
    quantization as the kernel so the comparison isolates the kernel math."""
    B = features.shape[0]
    labels = labels.reshape(-1, 1)
    mask = (labels == labels.T).astype(jnp.float32)
    if bf16_matmul:
        fb = features.astype(jnp.bfloat16)
        q = (fb.astype(jnp.float32) * (1.0 / temperature)).astype(jnp.bfloat16)
        adc = jax.lax.dot_general(q, fb, (((1,), (1,)), ((), ())),
                                  preferred_element_type=jnp.float32)
    else:
        adc = (features @ features.T) / temperature
    logits = adc - jnp.max(adc, axis=1, keepdims=True)
    logits_mask = 1.0 - jnp.eye(B, dtype=jnp.float32)
    mask = mask * logits_mask
    exp_logits = jnp.exp(logits) * logits_mask
    log_prob = logits - jnp.log(jnp.sum(exp_logits, axis=1, keepdims=True))
    mean_log_prob_pos = jnp.sum(mask * log_prob, axis=1) / jnp.sum(mask, axis=1)
    loss = -(temperature / base_temperature) * mean_log_prob_pos
    return jnp.mean(loss)


if __name__ == "__main__":
    key = jax.random.PRNGKey(0)
    k1, k2 = jax.random.split(key)

    # Test 1: tiny batch (padding up to a single 128x128 tile).
    B, D = 8, 32
    feats = jax.random.normal(k1, (B, D), dtype=jnp.float32)
    feats = feats / jnp.linalg.norm(feats, axis=1, keepdims=True)
    labels = jnp.array([0, 0, 1, 1, 2, 2, 3, 3], dtype=jnp.int32)
    loss = jax.block_until_ready(supclu_loss(feats, labels=labels))
    ref = _reference(feats, labels)
    assert jnp.allclose(loss, ref, rtol=2e-2, atol=2e-2), (loss, ref)

    # Test 2: multi-tile grid (2x2 tiles, B not a multiple of the tile size).
    B2, D2 = 200, 128
    feats2 = jax.random.normal(k2, (B2, D2), dtype=jnp.float32)
    feats2 = feats2 / jnp.linalg.norm(feats2, axis=1, keepdims=True)
    labels2 = jnp.arange(B2, dtype=jnp.int32) % 25   # every label appears 8 times
    loss2 = jax.block_until_ready(supclu_loss(feats2, labels=labels2))
    ref2 = _reference(feats2, labels2)
    assert jnp.allclose(loss2, ref2, rtol=2e-2, atol=2e-2), (loss2, ref2)

    print("KERNEL_OK")
</pallas_src>

<mosaic_0001>
module attributes {stable_mosaic.version = 11 : i64} {
  func.func @_supclu_kernel(%arg0: i32, %arg1: i32, %arg2: memref<128x1xi32, #tpu.memory_space<vmem>>, %arg3: memref<1x128xi32, #tpu.memory_space<vmem>>, %arg4: memref<128x32xbf16, #tpu.memory_space<vmem>>, %arg5: memref<128x32xbf16, #tpu.memory_space<vmem>>, %arg6: memref<128x1xf32, #tpu.memory_space<vmem>>, %arg7: memref<128x1xf32, #tpu.memory_space<vmem>>, %arg8: memref<128x1xf32, #tpu.memory_space<vmem>>, %arg9: memref<128x1xf32, #tpu.memory_space<vmem>>, %arg10: memref<128x1xf32, #tpu.memory_space<vmem>>) attributes {dimension_semantics = [#tpu.dimension_semantics<parallel>, #tpu.dimension_semantics<arbitrary>], iteration_bounds = array<i64: 1, 1>, scalar_prefetch = 0 : i64, scratch_operands = 4 : i64, tpu.core_type = #tpu.core_type<tc>, window_params = [{transform_indices = @transform_0, window_bounds = array<i64: 128, 1>}, {transform_indices = @transform_1, window_bounds = array<i64: 1, 128>}, {transform_indices = @transform_2, window_bounds = array<i64: 128, 32>}, {transform_indices = @transform_3, window_bounds = array<i64: 128, 32>}, {transform_indices = @transform_4, window_bounds = array<i64: 128, 1>}]} {
    %c0_i32 = arith.constant 0 : i32
    %0 = arith.cmpi eq, %arg1, %c0_i32 : i32
    %1 = arith.extui %0 : i1 to i32
    %c0_i32_0 = arith.constant 0 : i32
    %2 = arith.cmpi ne, %1, %c0_i32_0 : i32
    scf.if %2 {
      %cst_36 = arith.constant 0xFF800000 : f32
      %68 = vector.broadcast %cst_36 : f32 to vector<128x1xf32>
      %c0_37 = arith.constant 0 : index
      %c0_38 = arith.constant 0 : index
      %69 = vector.load %arg7[%c0_37, %c0_38] : memref<128x1xf32, #tpu.memory_space<vmem>>, vector<128x1xf32>
      tpu.vector_store %arg7[%c0_37, %c0_38], %68 {strides = array<i32>} : memref<128x1xf32, #tpu.memory_space<vmem>>, vector<128x1xf32>,
      %cst_39 = arith.constant 0.000000e+00 : f32
      %70 = vector.broadcast %cst_39 : f32 to vector<128x1xf32>
      %c0_40 = arith.constant 0 : index
      %c0_41 = arith.constant 0 : index
      %71 = vector.load %arg8[%c0_40, %c0_41] : memref<128x1xf32, #tpu.memory_space<vmem>>, vector<128x1xf32>
      tpu.vector_store %arg8[%c0_40, %c0_41], %70 {strides = array<i32>} : memref<128x1xf32, #tpu.memory_space<vmem>>, vector<128x1xf32>,
      %cst_42 = arith.constant 0.000000e+00 : f32
      %72 = vector.broadcast %cst_42 : f32 to vector<128x1xf32>
      %c0_43 = arith.constant 0 : index
      %c0_44 = arith.constant 0 : index
      %73 = vector.load %arg9[%c0_43, %c0_44] : memref<128x1xf32, #tpu.memory_space<vmem>>, vector<128x1xf32>
      tpu.vector_store %arg9[%c0_43, %c0_44], %72 {strides = array<i32>} : memref<128x1xf32, #tpu.memory_space<vmem>>, vector<128x1xf32>,
      %cst_45 = arith.constant 0.000000e+00 : f32
      %74 = vector.broadcast %cst_45 : f32 to vector<128x1xf32>
      %c0_46 = arith.constant 0 : index
      %c0_47 = arith.constant 0 : index
      %75 = vector.load %arg10[%c0_46, %c0_47] : memref<128x1xf32, #tpu.memory_space<vmem>>, vector<128x1xf32>
      tpu.vector_store %arg10[%c0_46, %c0_47], %74 {strides = array<i32>} : memref<128x1xf32, #tpu.memory_space<vmem>>, vector<128x1xf32>,
    } else {
    }
    %c0 = arith.constant 0 : index
    %c0_1 = arith.constant 0 : index
    %3 = vector.load %arg4[%c0, %c0_1] : memref<128x32xbf16, #tpu.memory_space<vmem>>, vector<128x32xbf16>
    %4 = arith.extf %3 : vector<128x32xbf16> to vector<128x32xf32>
    %cst = arith.constant 14.2857141 : f32
    %5 = vector.broadcast %cst : f32 to vector<128x32xf32>
    %6 = arith.mulf %4, %5 : vector<128x32xf32>
    %7 = arith.truncf %6 : vector<128x32xf32> to vector<128x32xbf16>
    %c0_2 = arith.constant 0 : index
    %c0_3 = arith.constant 0 : index
    %8 = vector.load %arg5[%c0_2, %c0_3] : memref<128x32xbf16, #tpu.memory_space<vmem>>, vector<128x32xbf16>
    %cst_4 = arith.constant dense<0.000000e+00> : vector<128x128xf32>
    %9 = tpu.matmul %7, %8, %cst_4 {dimension_numbers = #tpu.dot_dimension_numbers<[1], [1], [0], [0], [0, 0, 1, 0], [], []>} : vector<128x32xbf16>, vector<128x32xbf16>, vector<128x128xf32> -> vector<128x128xf32>
    %c128_i32 = arith.constant 128 : i32
    %10 = arith.muli %arg0, %c128_i32 : i32
    %11 = tpu.iota {dimensions = array<i32: 0>} : vector<128x1xi32>
    %12 = vector.broadcast %10 : i32 to vector<128x1xi32>
    %13 = arith.addi %12, %11 : vector<128x1xi32>
    %c128_i32_5 = arith.constant 128 : i32
    %14 = arith.muli %arg1, %c128_i32_5 : i32
    %15 = tpu.iota {dimensions = array<i32: 1>} : vector<1x128xi32>
    %16 = vector.broadcast %14 : i32 to vector<1x128xi32>
    %17 = arith.addi %16, %15 : vector<1x128xi32>
    %18 = vector.broadcast %13 : vector<128x1xi32> to vector<128x128xi32>
    %19 = vector.broadcast %17 : vector<1x128xi32> to vector<128x128xi32>
    %20 = arith.cmpi ne, %18, %19 : vector<128x128xi32>
    %c8_i32 = arith.constant 8 : i32
    %21 = vector.broadcast %c8_i32 : i32 to vector<1x128xi32>
    %22 = arith.cmpi slt, %17, %21 : vector<1x128xi32>
    %23 = vector.broadcast %22 : vector<1x128xi1> to vector<128x128xi1>
    %24 = arith.andi %20, %23 : vector<128x128xi1>
    %cst_6 = arith.constant 1.000000e+00 : f32
    %cst_7 = arith.constant 0.000000e+00 : f32
    %25 = vector.broadcast %cst_6 : f32 to vector<128x128xf32>
    %26 = vector.broadcast %cst_7 : f32 to vector<128x128xf32>
    %27 = arith.select %24, %25, %26 : vector<128x128xi1>, vector<128x128xf32>
    %c0_8 = arith.constant 0 : index
    %c0_9 = arith.constant 0 : index
    %28 = vector.load %arg2[%c0_8, %c0_9] : memref<128x1xi32, #tpu.memory_space<vmem>>, vector<128x1xi32>
    %c0_10 = arith.constant 0 : index
    %c0_11 = arith.constant 0 : index
    %29 = vector.load %arg3[%c0_10, %c0_11] : memref<1x128xi32, #tpu.memory_space<vmem>>, vector<1x128xi32>
    %30 = vector.broadcast %28 : vector<128x1xi32> to vector<128x128xi32>
    %31 = vector.broadcast %29 : vector<1x128xi32> to vector<128x128xi32>
    %32 = arith.cmpi eq, %30, %31 : vector<128x128xi32>
    %33 = arith.andi %32, %20 : vector<128x128xi1>
    %cst_12 = arith.constant 1.000000e+00 : f32
    %cst_13 = arith.constant 0.000000e+00 : f32
    %34 = vector.broadcast %cst_12 : f32 to vector<128x128xf32>
    %35 = vector.broadcast %cst_13 : f32 to vector<128x128xf32>
    %36 = arith.select %33, %34, %35 : vector<128x128xi1>, vector<128x128xf32>
    %c0_14 = arith.constant 0 : index
    %c0_15 = arith.constant 0 : index
    %37 = vector.load %arg7[%c0_14, %c0_15] : memref<128x1xf32, #tpu.memory_space<vmem>>, vector<128x1xf32>
    %cst_16 = arith.constant dense<0xFF800000> : vector<128xf32>
    %38 = vector.multi_reduction <maximumf>, %9, %cst_16 [1] : vector<128x128xf32> to vector<128xf32>
    %39 = vector.shape_cast %38 : vector<128xf32> to vector<128x1xf32>
    %40 = arith.maximumf %37, %39 : vector<128x1xf32>
    %41 = arith.subf %37, %40 : vector<128x1xf32>
    %42 = math.exp %41 : vector<128x1xf32>
    %43 = vector.broadcast %40 : vector<128x1xf32> to vector<128x128xf32>
    %44 = arith.subf %9, %43 : vector<128x128xf32>
    %45 = math.exp %44 : vector<128x128xf32>
    %46 = arith.mulf %45, %27 : vector<128x128xf32>
    %c0_17 = arith.constant 0 : index
    %c0_18 = arith.constant 0 : index
    %47 = vector.load %arg8[%c0_17, %c0_18] : memref<128x1xf32, #tpu.memory_space<vmem>>, vector<128x1xf32>
    %48 = arith.mulf %42, %47 : vector<128x1xf32>
    %cst_19 = arith.constant dense<0.000000e+00> : vector<128xf32>
    %49 = vector.multi_reduction <add>, %46, %cst_19 [1] : vector<128x128xf32> to vector<128xf32>
    %50 = vector.shape_cast %49 : vector<128xf32> to vector<128x1xf32>
    %51 = arith.addf %48, %50 : vector<128x1xf32>
    %c0_20 = arith.constant 0 : index
    %c0_21 = arith.constant 0 : index
    %52 = vector.load %arg8[%c0_20, %c0_21] : memref<128x1xf32, #tpu.memory_space<vmem>>, vector<128x1xf32>
    tpu.vector_store %arg8[%c0_20, %c0_21], %51 {strides = array<i32>} : memref<128x1xf32, #tpu.memory_space<vmem>>, vector<128x1xf32>,
    %c0_22 = arith.constant 0 : index
    %c0_23 = arith.constant 0 : index
    %53 = vector.load %arg9[%c0_22, %c0_23] : memref<128x1xf32, #tpu.memory_space<vmem>>, vector<128x1xf32>
    %54 = arith.mulf %36, %9 : vector<128x128xf32>
    %cst_24 = arith.constant dense<0.000000e+00> : vector<128xf32>
    %55 = vector.multi_reduction <add>, %54, %cst_24 [1] : vector<128x128xf32> to vector<128xf32>
    %56 = vector.shape_cast %55 : vector<128xf32> to vector<128x1xf32>
    %57 = arith.addf %53, %56 : vector<128x1xf32>
    %c0_25 = arith.constant 0 : index
    %c0_26 = arith.constant 0 : index
    %58 = vector.load %arg9[%c0_25, %c0_26] : memref<128x1xf32, #tpu.memory_space<vmem>>, vector<128x1xf32>
    tpu.vector_store %arg9[%c0_25, %c0_26], %57 {strides = array<i32>} : memref<128x1xf32, #tpu.memory_space<vmem>>, vector<128x1xf32>,
    %c0_27 = arith.constant 0 : index
    %c0_28 = arith.constant 0 : index
    %59 = vector.load %arg10[%c0_27, %c0_28] : memref<128x1xf32, #tpu.memory_space<vmem>>, vector<128x1xf32>
    %cst_29 = arith.constant dense<0.000000e+00> : vector<128xf32>
    %60 = vector.multi_reduction <add>, %36, %cst_29 [1] : vector<128x128xf32> to vector<128xf32>
    %61 = vector.shape_cast %60 : vector<128xf32> to vector<128x1xf32>
    %62 = arith.addf %59, %61 : vector<128x1xf32>
    %c0_30 = arith.constant 0 : index
    %c0_31 = arith.constant 0 : index
    %63 = vector.load %arg10[%c0_30, %c0_31] : memref<128x1xf32, #tpu.memory_space<vmem>>, vector<128x1xf32>
    tpu.vector_store %arg10[%c0_30, %c0_31], %62 {strides = array<i32>} : memref<128x1xf32, #tpu.memory_space<vmem>>, vector<128x1xf32>,
    %c0_32 = arith.constant 0 : index
    %c0_33 = arith.constant 0 : index
    %64 = vector.load %arg7[%c0_32, %c0_33] : memref<128x1xf32, #tpu.memory_space<vmem>>, vector<128x1xf32>
    tpu.vector_store %arg7[%c0_32, %c0_33], %40 {strides = array<i32>} : memref<128x1xf32, #tpu.memory_space<vmem>>, vector<128x1xf32>,
    %c0_i32_34 = arith.constant 0 : i32
    %65 = arith.cmpi eq, %arg1, %c0_i32_34 : i32
    %66 = arith.extui %65 : i1 to i32
    %c0_i32_35 = arith.constant 0 : i32
    %67 = arith.cmpi ne, %66, %c0_i32_35 : i32
    scf.if %67 {
      %c0_36 = arith.constant 0 : index
      %c0_37 = arith.constant 0 : index
      %68 = vector.load %arg10[%c0_36, %c0_37] : memref<128x1xf32, #tpu.memory_space<vmem>>, vector<128x1xf32>
      %cst_38 = arith.constant 1.000000e+00 : f32
      %69 = vector.broadcast %cst_38 : f32 to vector<128x1xf32>
      %70 = arith.maximumf %68, %69 : vector<128x1xf32>
      %71 = tpu.reciprocal %70 {approx = true} : vector<128x1xf32> -> vector<128x1xf32>
      %c0_39 = arith.constant 0 : index
      %c0_40 = arith.constant 0 : index
      %72 = vector.load %arg9[%c0_39, %c0_40] : memref<128x1xf32, #tpu.memory_space<vmem>>, vector<128x1xf32>
      %73 = arith.mulf %72, %71 : vector<128x1xf32>
      %c0_41 = arith.constant 0 : index
      %c0_42 = arith.constant 0 : index
      %74 = vector.load %arg7[%c0_41, %c0_42] : memref<128x1xf32, #tpu.memory_space<vmem>>, vector<128x1xf32>
      %75 = arith.subf %73, %74 : vector<128x1xf32>
      %c0_43 = arith.constant 0 : index
      %c0_44 = arith.constant 0 : index
      %76 = vector.load %arg8[%c0_43, %c0_44] : memref<128x1xf32, #tpu.memory_space<vmem>>, vector<128x1xf32>
      %77 = math.log %76 : vector<128x1xf32>
      %78 = arith.subf %75, %77 : vector<128x1xf32>
      %cst_45 = arith.constant -1.000000e+00 : f32
      %79 = vector.broadcast %cst_45 : f32 to vector<128x1xf32>
      %80 = arith.mulf %79, %78 : vector<128x1xf32>
      %c8_i32_46 = arith.constant 8 : i32
      %81 = vector.broadcast %c8_i32_46 : i32 to vector<128x1xi32>
      %82 = arith.cmpi slt, %13, %81 : vector<128x1xi32>
      %cst_47 = arith.constant 0.000000e+00 : f32
      %83 = vector.broadcast %cst_47 : f32 to vector<128x1xf32>
      %84 = arith.cmpf ogt, %68, %83 : vector<128x1xf32>
      %85 = arith.andi %82, %84 : vector<128x1xi1>
      %cst_48 = arith.constant 0.000000e+00 : f32
      %86 = vector.broadcast %cst_48 : f32 to vector<128x1xf32>
      %87 = arith.select %85, %80, %86 : vector<128x1xi1>, vector<128x1xf32>
      %c0_49 = arith.constant 0 : index
      %c0_50 = arith.constant 0 : index
      %88 = vector.load %arg6[%c0_49, %c0_50] : memref<128x1xf32, #tpu.memory_space<vmem>>, vector<128x1xf32>
      tpu.vector_store %arg6[%c0_49, %c0_50], %87 {strides = array<i32>} : memref<128x1xf32, #tpu.memory_space<vmem>>, vector<128x1xf32>,
    } else {
    }
    return
  }
  func.func @transform_0(%arg0: i32, %arg1: i32) -> (i32, i32) {
    %c0_i32 = arith.constant 0 : i32
    %c0_i32_0 = arith.constant 0 : i32
    return %arg0, %c0_i32 : i32, i32
  }
  func.func @transform_1(%arg0: i32, %arg1: i32) -> (i32, i32) {
    %c0_i32 = arith.constant 0 : i32
    %c0_i32_0 = arith.constant 0 : i32
    return %c0_i32, %arg1 : i32, i32
  }
  func.func @transform_2(%arg0: i32, %arg1: i32) -> (i32, i32) {
    %c0_i32 = arith.constant 0 : i32
    %c0_i32_0 = arith.constant 0 : i32
    return %arg0, %c0_i32 : i32, i32
  }
  func.func @transform_3(%arg0: i32, %arg1: i32) -> (i32, i32) {
    %c0_i32 = arith.constant 0 : i32
    %c0_i32_0 = arith.constant 0 : i32
    return %arg1, %c0_i32 : i32, i32
  }
  func.func @transform_4(%arg0: i32, %arg1: i32) -> (i32, i32) {
    %c0_i32 = arith.constant 0 : i32
    %c0_i32_0 = arith.constant 0 : i32
    return %arg0, %c0_i32 : i32, i32
  }
}

</mosaic_0001>

<bundles_post_ra>
// kernel: tpu_custom_call.1
= control target key start
LH: loop header
LB: loop body
LE: loop exit
PB: predicated region body
PF: predicated region fallthrough
CT: control target
= control target key end

     0   :  { %vm199_vm0 = vcmask 261120   ;;  %v1594_v1 = vmov 0   ;;  %vm22_vm4 = vcmask 7168   ;;  %s2647_s3 = inlined_call_operand.vmem [shape: bf16[128,32], index: 3, kind: input, shape index: {}]   ;;  %s2648_s2 = inlined_call_operand.vmem [shape: bf16[128,32], index: 2, kind: input, shape index: {}]   ;;  %s2649_s0 = inlined_call_operand.vmem [shape: s32[128,1], index: 0, kind: input, shape index: {}]   ;;  %s2650_s1 = inlined_call_operand.vmem [shape: s32[1,128], index: 1, kind: input, shape index: {}]   ;;  %s2651_s4 = inlined_call_operand.vmem [shape: f32[128,1], index: 4, kind: output, shape index: {}]  }
   0x1   :  { %v1518_v0 = vld [vmem:[%s2647_s3] sm:$0xff]   ;;  %1516 = vset.pattern.permute.xlu0 %v1594_v1  ;;  %1517 = vset.pattern.permute.xlu1 %v1594_v1  ;;  %v1519_v2 = vld [vmem:[%s2647_s3 + $0x8] sm:$0xff]   ;;  %v1520_v5 = vld [vmem:[%s2647_s3 + $0x10] sm:$0xff]  }
   0x2   :  { %1497 = vmatprep.subr.msk.bf16.mxu0 %vm199_vm0, %v1518_v0  ;;  %1498 = vmatprep.subr.msk.bf16.mxu1 %vm199_vm0, %v1518_v0  ;;  %v225_v3 = vsel %vm199_vm0, %v1518_v0, 0  ;;  %v228_v4 = vsel %vm199_vm0, %v1519_v2, 0  ;;  %v1395_v6 = vld [vmem:[%s2648_s2] sm:$0xff]   ;;  %v437_v19 = vld [vmem:[%s2649_s0 + $0x8] sm:$0xff]  ;;  %v438_v20 = vld [vmem:[%s2649_s0 + $0x10] sm:$0xff]  ;;  %v231_v21 = vsel %vm199_vm0, %v1520_v5, 0 }
   0x3   :  { %1450 = vmatpush3.bf16.xpose.msra.mxu0 %v225_v3  ;;  %1489 = vmatpush3.bf16.xpose.msra.mxu1 %v225_v3  ;;  %v1429_v7 = vld [vmem:[%s2648_s2 + $0x20] sm:$0xff]   ;;  %v1396_v8 = vunpack.c.l.bf16 %v1395_v6  ;;  %v1397_v9 = vunpack.c.h.bf16 %v1395_v6  ;;  %v1521_v22 = vld [vmem:[%s2647_s3 + $0x18] sm:$0xff]   ;;  %v442_v25 = vld [vmem:[%s2649_s0 + $0x30] sm:$0xff] }
   0x4   :  { %1499 = vmatprep.subr.msk.bf16.mxu0 %vm199_vm0, %v1519_v2  ;;  %1500 = vmatprep.subr.msk.bf16.mxu1 %vm199_vm0, %v1519_v2  ;;  %v1412_v10 = vunpack.c.l.bf16 %v1429_v7  ;;  %v1413_v11 = vunpack.c.h.bf16 %v1429_v7  ;;  %v436_v12 = vld [vmem:[%s2649_s0] sm:$0xff]  ;;  %v439_v24 = vld [vmem:[%s2649_s0 + $0x18] sm:$0xff]  ;;  %v441_v26 = vld [vmem:[%s2649_s0 + $0x28] sm:$0xff]  ;;  %v234_v27 = vsel %vm199_vm0, %v1521_v22, 0 }
   0x5   :  { %v119_v13 = vmul.f32 14.285714, %v1396_v8  ;;  %v120_v14 = vmul.f32 14.285714, %v1397_v9  ;;  %454 = vperm.xlu0 %1516, %v436_v12   ;;  %460 = vperm.xlu1 %1517, %v438_v20   ;;  %v440_v23 = vld [vmem:[%s2649_s0 + $0x20] sm:$0xff]  ;;  %v443_v30 = vld [vmem:[%s2649_s0 + $0x38] sm:$0xff] }
   0x6   :  { %v127_v15 = vmul.f32 14.285714, %v1412_v10  ;;  %v128_v16 = vmul.f32 14.285714, %v1413_v11  ;;  %v1522_v28 = vld [vmem:[%s2647_s3 + $0x20] sm:$0xff]   ;;  %v446_v31 = vld [vmem:[%s2649_s0 + $0x50] sm:$0xff] }
   0x7   :  { %v135_v17 = vpack.c.bf16 %v120_v14, %v119_v13  ;;  %v444_v29 = vld [vmem:[%s2649_s0 + $0x40] sm:$0xff]  ;;  %v445_v32 = vld [vmem:[%s2649_s0 + $0x48] sm:$0xff]  ;;  %v237_v33 = vsel %vm199_vm0, %v1522_v28, 0  ;;  %v450_v35 = vld [vmem:[%s2649_s0 + $0x70] sm:$0xff] }
   0x8   :  { %v139_v18 = vpack.c.bf16 %v128_v16, %v127_v15  ;;  %v1523_v34 = vld [vmem:[%s2647_s3 + $0x28] sm:$0xff]   ;;  %v447_v36 = vld [vmem:[%s2649_s0 + $0x58] sm:$0xff]  ;;  %v448_v37 = vld [vmem:[%s2649_s0 + $0x60] sm:$0xff] }
   0x9   :  { %1465 = vmatprep.mubr.msk.bf16.mxu0 %vm199_vm0, %v135_v17  ;;  %457 = vperm.xlu0 %1516, %v437_v19   ;;  %v240_v38 = vsel %vm199_vm0, %v1523_v34, 0  ;;  %v1524_v39 = vld [vmem:[%s2647_s3 + $0x30] sm:$0xff]   ;;  %v449_v40 = vld [vmem:[%s2649_s0 + $0x68] sm:$0xff]  ;;  %v451_v41 = vld [vmem:[%s2649_s0 + $0x78] sm:$0xff]  ;;  %v346_v17 = vlaneseq }
   0xa   :  { %1473 = vmatprep.mubr.msk.bf16.mxu1 %vm199_vm0, %v139_v18  ;;  %463 = vperm.xlu1 %1517, %v439_v24   ;;  %v243_v42 = vsel %vm199_vm0, %v1524_v39, 0  ;;  %v1525_v43 = vld [vmem:[%s2647_s3 + $0x38] sm:$0xff]   ;;  %v1426_v44 = vld [vmem:[%s2648_s2 + $0x8] sm:$0xff]   ;;  %v1427_v46 = vld [vmem:[%s2648_s2 + $0x10] sm:$0xff]   ;;  %v1596_v24 = vmov -inf  }
   0xb   :  { %1452 = vmatpush3.bf16.xpose.msra.mxu0 %v228_v4  ;;  %1490 = vmatpush3.bf16.xpose.msra.mxu1 %v228_v4  ;;  %v1430_v45 = vld [vmem:[%s2648_s2 + $0x28] sm:$0xff]   ;;  %v1431_v47 = vld [vmem:[%s2648_s2 + $0x30] sm:$0xff]   ;;  %v1400_v48 = vunpack.c.l.bf16 %v1426_v44  ;;  %v1401_v49 = vunpack.c.h.bf16 %v1426_v44  ;;  %v1404_v52 = vunpack.c.l.bf16 %v1427_v46  ;;  %v1405_v53 = vunpack.c.h.bf16 %v1427_v46  ;;  %v1428_v59 = vld [vmem:[%s2648_s2 + $0x18] sm:$0xff]   ;;  %25 = vst.msk [vmem:[#allocation2 + $0x10] sm:$0xff] %vm22_vm4, %v1596_v24 }
   0xc   :  { %1501 = vmatprep.subr.msk.bf16.mxu0 %vm199_vm0, %v1520_v5  ;;  %1502 = vmatprep.subr.msk.bf16.mxu1 %vm199_vm0, %v1520_v5  ;;  %v1416_v50 = vunpack.c.l.bf16 %v1430_v45  ;;  %v1417_v51 = vunpack.c.h.bf16 %v1430_v45  ;;  %v1420_v54 = vunpack.c.l.bf16 %v1431_v47  ;;  %v1421_v55 = vunpack.c.h.bf16 %v1431_v47  ;;  %v1432_v60 = vld [vmem:[%s2648_s2 + $0x38] sm:$0xff]   ;;  %v1757_v20 = vld [vmem:[%s2650_s1] ss:$0 sm:$0xff]  ;;  %23 = vst.msk [vmem:[#allocation2] sm:$0xff] %vm22_vm4, %v1596_v24  ;;  %24 = vst.msk [vmem:[#allocation2 + $0x8] sm:$0xff] %vm22_vm4, %v1596_v24 }
   0xd   :  { %466 = vperm.xlu0 %1516, %v440_v23   ;;  %v246_v56 = vsel %vm199_vm0, %v1525_v43, 0  ;;  %v121_v57 = vmul.f32 14.285714, %v1400_v48  ;;  %v122_v58 = vmul.f32 14.285714, %v1401_v49  ;;  %v1408_v4 = vunpack.c.l.bf16 %v1428_v59  ;;  %26 = vst.msk [vmem:[#allocation2 + $0x18] sm:$0xff] %vm22_vm4, %v1596_v24 }
   0xe   :  { %469 = vperm.xlu1 %1517, %v441_v26   ;;  %v129_v61 = vmul.f32 14.285714, %v1416_v50  ;;  %v130_v62 = vmul.f32 14.285714, %v1417_v51  ;;  %v123_v63 = vmul.f32 14.285714, %v1404_v52  ;;  %v1409_v6 = vunpack.c.h.bf16 %v1428_v59 }
   0xf   :  { %v124_v0 = vmul.f32 14.285714, %v1405_v53  ;;  %v131_v1 = vmul.f32 14.285714, %v1420_v54  ;;  %v132_v2 = vmul.f32 14.285714, %v1421_v55  ;;  %v136_v3 = vpack.c.bf16 %v122_v58, %v121_v57 }
  0x10   :  { %v140_v5 = vpack.c.bf16 %v130_v62, %v129_v61  ;;  %v1424_v7 = vunpack.c.l.bf16 %v1432_v60  ;;  %v1425_v8 = vunpack.c.h.bf16 %v1432_v60  ;;  %v125_v11 = vmul.f32 14.285714, %v1408_v4  ;;  %27 = vst.msk [vmem:[#allocation2 + $0x20] sm:$0xff] %vm22_vm4, %v1596_v24  ;;  %28 = vst.msk [vmem:[#allocation2 + $0x28] sm:$0xff] %vm22_vm4, %v1596_v24 }
  0x11   :  { %472 = vperm.xlu0 %1516, %v442_v25   ;;  %v137_v9 = vpack.c.bf16 %v124_v0, %v123_v63  ;;  %v141_v10 = vpack.c.bf16 %v132_v2, %v131_v1  ;;  %v126_v12 = vmul.f32 14.285714, %v1409_v6  ;;  %v1750_v18 = vand.u32 127, %v346_v17  ;;  %29 = vst.msk [vmem:[#allocation2 + $0x30] sm:$0xff] %vm22_vm4, %v1596_v24  ;;  %30 = vst.msk [vmem:[#allocation2 + $0x38] sm:$0xff] %vm22_vm4, %v1596_v24 }
  0x12   :  { %475 = vperm.xlu1 %1517, %v443_v30   ;;  %v133_v13 = vmul.f32 14.285714, %v1424_v7  ;;  %v134_v14 = vmul.f32 14.285714, %v1425_v8  ;;  %v1752_v19 = vshrl.u32 %v346_v17, 7  ;;  %31 = vst.msk [vmem:[#allocation2 + $0x40] sm:$0xff] %vm22_vm4, %v1596_v24 }
  0x13   :  { %1454 = vmatpush3.bf16.xpose.msra.mxu0 %v231_v21  ;;  %1491 = vmatpush3.bf16.xpose.msra.mxu1 %v231_v21  ;;  %v138_v15 = vpack.c.bf16 %v126_v12, %v125_v11  ;;  %32 = vst.msk [vmem:[#allocation2 + $0x48] sm:$0xff] %vm22_vm4, %v1596_v24  ;;  %33 = vst.msk [vmem:[#allocation2 + $0x50] sm:$0xff] %vm22_vm4, %v1596_v24 }
  0x14   :  { %1503 = vmatprep.subr.msk.bf16.mxu0 %vm199_vm0, %v1521_v22  ;;  %1504 = vmatprep.subr.msk.bf16.mxu1 %vm199_vm0, %v1521_v22  ;;  %v142_v16 = vpack.c.bf16 %v134_v14, %v133_v13  ;;  %vm385_vm1 = vcmp.ne.s32.totalorder %v1752_v19, %v1750_v18  ;;  %v2654_v22 = vmov 0.0   ;;  %34 = vst.msk [vmem:[#allocation2 + $0x58] sm:$0xff] %vm22_vm4, %v1596_v24  ;;  %35 = vst.msk [vmem:[#allocation2 + $0x60] sm:$0xff] %vm22_vm4, %v1596_v24  ;;  %v1946_v51 = vadd.s32 16, %v1752_v19 }
  0x15   :  { %478 = vperm.xlu0 %1516, %v444_v29   ;;  %71 = vst.msk [vmem:[#allocation5] sm:$0xff] %vm22_vm4, %v2654_v22  ;;  %39 = vst.msk [vmem:[#allocation3] sm:$0xff] %vm22_vm4, %v2654_v22  ;;  %v1950_v52 = vadd.s32 8, %v1752_v19  ;;  %v1962_v54 = vadd.s32 72, %v1752_v19  ;;  %v2047_v13 = vadd.s32 64, %v1752_v19  ;;  %v2061_v17 = vadd.s32 56, %v1752_v19 }
  0x16   :  { %481 = vperm.xlu1 %1517, %v445_v32   ;;  %40 = vst.msk [vmem:[#allocation3 + $0x8] sm:$0xff] %vm22_vm4, %v2654_v22  ;;  %41 = vst.msk [vmem:[#allocation3 + $0x10] sm:$0xff] %vm22_vm4, %v2654_v22  ;;  %vm387_vm14 = vcmp.ne.s32.totalorder %v1946_v51, %v1750_v18 }
  0x17   :  { %42 = vst.msk [vmem:[#allocation3 + $0x18] sm:$0xff] %vm22_vm4, %v2654_v22  ;;  %43 = vst.msk [vmem:[#allocation3 + $0x20] sm:$0xff] %vm22_vm4, %v2654_v22 }
  0x18   :  { %44 = vst.msk [vmem:[#allocation3 + $0x28] sm:$0xff] %vm22_vm4, %v2654_v22  ;;  %45 = vst.msk [vmem:[#allocation3 + $0x30] sm:$0xff] %vm22_vm4, %v2654_v22 }
  0x19   :  { %484 = vperm.xlu0 %1516, %v446_v31   ;;  %46 = vst.msk [vmem:[#allocation3 + $0x38] sm:$0xff] %vm22_vm4, %v2654_v22  ;;  %47 = vst.msk [vmem:[#allocation3 + $0x40] sm:$0xff] %vm22_vm4, %v2654_v22 }
  0x1a   :  { %487 = vperm.xlu1 %1517, %v447_v36   ;;  %48 = vst.msk [vmem:[#allocation3 + $0x48] sm:$0xff] %vm22_vm4, %v2654_v22  ;;  %49 = vst.msk [vmem:[#allocation3 + $0x50] sm:$0xff] %vm22_vm4, %v2654_v22 }
  0x1b   :  { %1456 = vmatpush3.bf16.xpose.msra.mxu0 %v234_v27  ;;  %1492 = vmatpush3.bf16.xpose.msra.mxu1 %v234_v27  ;;  %50 = vst.msk [vmem:[#allocation3 + $0x58] sm:$0xff] %vm22_vm4, %v2654_v22  ;;  %51 = vst.msk [vmem:[#allocation3 + $0x60] sm:$0xff] %vm22_vm4, %v2654_v22 }
  0x1c   :  { %1505 = vmatprep.subr.msk.bf16.mxu0 %vm199_vm0, %v1522_v28  ;;  %1506 = vmatprep.subr.msk.bf16.mxu1 %vm199_vm0, %v1522_v28  ;;  %52 = vst.msk [vmem:[#allocation3 + $0x68] sm:$0xff] %vm22_vm4, %v2654_v22  ;;  %53 = vst.msk [vmem:[#allocation3 + $0x70] sm:$0xff] %vm22_vm4, %v2654_v22  ;;  %v1002_v63 = vld [vmem:[#allocation5] sm:$0xff] }
  0x1d   :  { %496 = vperm.xlu0 %1516, %v450_v35   ;;  %54 = vst.msk [vmem:[#allocation3 + $0x78] sm:$0xff] %vm22_vm4, %v2654_v22  ;;  %55 = vst.msk [vmem:[#allocation4] sm:$0xff] %vm22_vm4, %v2654_v22 }
  0x1e   :  { %490 = vperm.xlu1 %1517, %v448_v37   ;;  %56 = vst.msk [vmem:[#allocation4 + $0x8] sm:$0xff] %vm22_vm4, %v2654_v22  ;;  %57 = vst.msk [vmem:[#allocation4 + $0x10] sm:$0xff] %vm22_vm4, %v2654_v22 }
  0x1f   :  { %58 = vst.msk [vmem:[#allocation4 + $0x18] sm:$0xff] %vm22_vm4, %v2654_v22  ;;  %59 = vst.msk [vmem:[#allocation4 + $0x20] sm:$0xff] %vm22_vm4, %v2654_v22 }
  0x20   :  { %60 = vst.msk [vmem:[#allocation4 + $0x28] sm:$0xff] %vm22_vm4, %v2654_v22  ;;  %61 = vst.msk [vmem:[#allocation4 + $0x30] sm:$0xff] %vm22_vm4, %v2654_v22 }
  0x21   :  { %62 = vst.msk [vmem:[#allocation4 + $0x38] sm:$0xff] %vm22_vm4, %v2654_v22  ;;  %63 = vst.msk [vmem:[#allocation4 + $0x40] sm:$0xff] %vm22_vm4, %v2654_v22 }
  0x22   :  { %493 = vperm.xlu1 %1517, %v449_v40   ;;  %64 = vst.msk [vmem:[#allocation4 + $0x48] sm:$0xff] %vm22_vm4, %v2654_v22  ;;  %65 = vst.msk [vmem:[#allocation4 + $0x50] sm:$0xff] %vm22_vm4, %v2654_v22  ;;  %v1912_v40 = vadd.s32 24, %v1752_v19 }
  0x23   :  { %1458 = vmatpush3.bf16.xpose.msra.mxu0 %v237_v33  ;;  %1493 = vmatpush3.bf16.xpose.msra.mxu1 %v237_v33  ;;  %66 = vst.msk [vmem:[#allocation4 + $0x58] sm:$0xff] %vm22_vm4, %v2654_v22  ;;  %67 = vst.msk [vmem:[#allocation4 + $0x60] sm:$0xff] %vm22_vm4, %v2654_v22 }
  0x24   :  { %1507 = vmatprep.subr.msk.bf16.mxu0 %vm199_vm0, %v1523_v34  ;;  %1508 = vmatprep.subr.msk.bf16.mxu1 %vm199_vm0, %v1523_v34  ;;  %68 = vst.msk [vmem:[#allocation4 + $0x68] sm:$0xff] %vm22_vm4, %v2654_v22  ;;  %69 = vst.msk [vmem:[#allocation4 + $0x70] sm:$0xff] %vm22_vm4, %v2654_v22  ;;  %v1894_v34 = vadd.s32 88, %v1752_v19  ;;  %vm388_vm10 = vcmp.ne.s32.totalorder %v1912_v40, %v1750_v18 }
  0x25   :  { %70 = vst.msk [vmem:[#allocation4 + $0x78] sm:$0xff] %vm22_vm4, %v2654_v22  ;;  %72 = vst.msk [vmem:[#allocation5 + $0x8] sm:$0xff] %vm22_vm4, %v2654_v22 }
  0x26   :  { %499 = vperm.xlu1 %1517, %v451_v41   ;;  %73 = vst.msk [vmem:[#allocation5 + $0x10] sm:$0xff] %vm22_vm4, %v2654_v22  ;;  %74 = vst.msk [vmem:[#allocation5 + $0x18] sm:$0xff] %vm22_vm4, %v2654_v22  ;;  %vm396_vm5 = vcmp.ne.s32.totalorder %v1894_v34, %v1750_v18 }
  0x27   :  { %75 = vst.msk [vmem:[#allocation5 + $0x20] sm:$0xff] %vm22_vm4, %v2654_v22  ;;  %76 = vst.msk [vmem:[#allocation5 + $0x28] sm:$0xff] %vm22_vm4, %v2654_v22 }
  0x28   :  { %77 = vst.msk [vmem:[#allocation5 + $0x30] sm:$0xff] %vm22_vm4, %v2654_v22  ;;  %78 = vst.msk [vmem:[#allocation5 + $0x38] sm:$0xff] %vm22_vm4, %v2654_v22 }
  0x29   :  { %79 = vst.msk [vmem:[#allocation5 + $0x40] sm:$0xff] %vm22_vm4, %v2654_v22  ;;  %80 = vst.msk [vmem:[#allocation5 + $0x48] sm:$0xff] %vm22_vm4, %v2654_v22 }
  0x2a   :  { %81 = vst.msk [vmem:[#allocation5 + $0x50] sm:$0xff] %vm22_vm4, %v2654_v22  ;;  %82 = vst.msk [vmem:[#allocation5 + $0x58] sm:$0xff] %vm22_vm4, %v2654_v22 }
  0x2b   :  { %1460 = vmatpush3.bf16.xpose.msra.mxu0 %v240_v38  ;;  %1494 = vmatpush3.bf16.xpose.msra.mxu1 %v240_v38  ;;  %83 = vst.msk [vmem:[#allocation5 + $0x60] sm:$0xff] %vm22_vm4, %v2654_v22  ;;  %84 = vst.msk [vmem:[#allocation5 + $0x68] sm:$0xff] %vm22_vm4, %v2654_v22  ;;  %v1909_v38 = vadd.s32 104, %v1752_v19 }
  0x2c   :  { %1509 = vmatprep.subr.msk.bf16.mxu0 %vm199_vm0, %v1524_v39  ;;  %1510 = vmatprep.subr.msk.bf16.mxu1 %vm199_vm0, %v1524_v39  ;;  %85 = vst.msk [vmem:[#allocation5 + $0x70] sm:$0xff] %vm22_vm4, %v2654_v22  ;;  %86 = vst.msk [vmem:[#allocation5 + $0x78] sm:$0xff] %vm22_vm4, %v2654_v22 }
  0x2d   :  { %36 = vst.msk [vmem:[#allocation2 + $0x68] sm:$0xff] %vm22_vm4, %v1596_v24  ;;  %37 = vst.msk [vmem:[#allocation2 + $0x70] sm:$0xff] %vm22_vm4, %v1596_v24  ;;  %vm2652_vm8 = vcmp.ne.s32.totalorder %v1909_v38, %v1750_v18 }
  0x2e   :  { %38 = vst.msk [vmem:[#allocation2 + $0x78] sm:$0xff] %vm22_vm4, %v1596_v24  ;;  %2684 = vst [vmem:[#allocation6_spill] sm:$0xff] %v1909_v38  ;;  %v2070_v24 = vadd.s32 40, %v1752_v19 }
  0x33   :  { %1462 = vmatpush3.bf16.xpose.msra.mxu0 %v243_v42  ;;  %1495 = vmatpush3.bf16.xpose.msra.mxu1 %v243_v42 }
  0x34   :  { %1511 = vmatprep.subr.msk.bf16.mxu0 %vm199_vm0, %v1525_v43  ;;  %1512 = vmatprep.subr.msk.bf16.mxu1 %vm199_vm0, %v1525_v43 }
  0x3b   :  { %1464 = vmatpush3.bf16.xpose.msra.mxu0 %v246_v56  ;;  %1496 = vmatpush3.bf16.xpose.msra.mxu1 %v246_v56 }
  0x42   :  { %1466 = vmatmul.mubr.msk.bf16.vlgmr.msra.gmra.mrb[0].mxu0 %vm199_vm0, %v136_v3  ;;  %1474 = vmatmul.mubr.msk.bf16.vlgmr.msra.gmra.mrb[0].mxu1 %vm199_vm0, %v140_v5  ;;  %v2003_v3 = vadd.s32 80, %v1752_v19 }
  0x43   :  { %1469 = vmatprep.mubr.msk.bf16.mxu0 %vm199_vm0, %v137_v9  ;;  %1477 = vmatprep.mubr.msk.bf16.mxu1 %vm199_vm0, %v141_v10 }
  0x4a   :  { %1470 = vmatmul.mubr.msk.bf16.gmra.mrb[4].mxu0 %vm199_vm0, %v138_v15  ;;  %1478 = vmatmul.mubr.msk.bf16.gmra.mrb[4].mxu1 %vm199_vm0, %v142_v16  ;;  %vm386_vm0 = vcmp.ne.s32.totalorder %v1950_v52, %v1750_v18 }
  0x84   :  { %v455_v21 = vpop.permute.xlu0 %454  ;;  %v461_v25 = vpop.permute.xlu1 %460 }
  0x85   :  { %vm505_vm2 = vcmp.eq.s32.totalorder %v455_v21, %v1757_v20  ;;  %vm507_vm15 = vcmp.eq.s32.totalorder %v461_v25, %v1757_v20 }
  0x86   :  { %vm521_vm3 = vmand %vm505_vm2, %vm385_vm1 }
  0x87   :  { %v1766_v23 = vsel %vm521_vm3, 1.0, %v2654_v22  ;;  %vm1998_vm3 = vmand %vm507_vm15, %vm387_vm14 }
  0x88   :  { %1018 = vadd.xlane.f32.xlu0 %v1766_v23  ;;  %v1883_v28 = vpop.permute.xlu0 %457  ;;  %v2033_v9 = vsel %vm1998_vm3, 1.0, %v2654_v22 }
  0x89   :  { %v464_v26 = vpop.permute.xlu1 %463  ;;  %vm506_vm2 = vcmp.eq.s32.totalorder %v1883_v28, %v1757_v20 }
  0x8a   :  { %vm508_vm11 = vcmp.eq.s32.totalorder %v464_v26, %v1757_v20 }
  0x8b   :  { %vm524_vm13 = vmand %vm508_vm11, %vm388_vm10 }
  0x8c   :  { %v1887_v30 = vpop.permute.xlu0 %466  ;;  %v1984_v60 = vsel %vm524_vm13, 1.0, %v2654_v22 }
  0x8d   :  { %v1881_v27 = vpop.permute.xlu1 %469 }
  0x90   :  { %v1891_v32 = vpop.permute.xlu0 %472 }
  0x91   :  { %v1885_v29 = vpop.permute.xlu1 %475 }
  0x94   :  { %v1896_v35 = vpop.permute.xlu0 %478 }
  0x95   :  { %v1889_v31 = vpop.permute.xlu1 %481  ;;  %vm513_vm3 = vcmp.eq.s32.totalorder %v1896_v35, %v1757_v20 }
  0x98   :  { %v1906_v37 = vpop.permute.xlu0 %484 }
  0x99   :  { %v488_v33 = vpop.permute.xlu1 %487  ;;  %vm515_vm13 = vcmp.eq.s32.totalorder %v1906_v37, %v1757_v20 }
  0x9a   :  { %vm516_vm6 = vcmp.eq.s32.totalorder %v488_v33, %v1757_v20  ;;  %v2110_v33 = vadd.s32 32, %v1752_v19 }
  0x9b   :  { %vm532_vm7 = vmand %vm516_vm6, %vm396_vm5  ;;  %vm394_vm6 = vcmp.ne.s32.totalorder %v1962_v54, %v1750_v18 }
  0x9c   :  { %v1919_v43 = vsel %vm532_vm7, 1.0, %v2654_v22  ;;  %v1958_v53 = vpop.permute.xlu0 %496  ;;  %vm514_vm7 = vcmp.eq.s32.totalorder %v1889_v31, %v1757_v20 }
  0x9d   :  { %v1898_v36 = vpop.permute.xlu1 %490  ;;  %vm530_vm11 = vmand %vm514_vm7, %vm394_vm6 }
  0x9e   :  { %v2039_v11 = vsel %vm530_vm11, 1.0, %v2654_v22  ;;  %vm512_vm11 = vcmp.eq.s32.totalorder %v1885_v29, %v1757_v20  ;;  %v2101_v29 = vadd.s32 48, %v1752_v19 }
  0xa1   :  { %v494_v39 = vpop.permute.xlu1 %493 }
  0xa2   :  { %vm518_vm9 = vcmp.eq.s32.totalorder %v494_v39, %v1757_v20 }
  0xa3   :  { %vm534_vm12 = vmand %vm518_vm9, %vm2652_vm8  ;;  %vm509_vm8 = vcmp.eq.s32.totalorder %v1887_v30, %v1757_v20 }
  0xa4   :  { %v1977_v59 = vsel %vm534_vm12, 1.0, %v2654_v22  ;;  %vm522_vm9 = vmand %vm506_vm2, %vm386_vm0  ;;  %vm395_vm12 = vcmp.ne.s32.totalorder %v2003_v3, %v1750_v18  ;;  %vm393_vm2 = vcmp.ne.s32.totalorder %v2047_v13, %v1750_v18 }
  0xa5   :  { %v2028_v8 = vsel %vm522_vm9, 1.0, %v2654_v22  ;;  %vm531_vm15 = vmand %vm515_vm13, %vm395_vm12  ;;  %vm2679_vm9 = vcmp.ne.s32.totalorder %v2061_v17, %v1750_v18  ;;  %v2138_v30 = vpop.permute.xlu1 %499 }
  0xa6   :  { %v2052_v15 = vsel %vm531_vm15, 1.0, %v2654_v22  ;;  %vm529_vm7 = vmand %vm513_vm3, %vm393_vm2  ;;  %vm2653_vm15 = vcmp.ne.s32.totalorder %v2070_v24, %v1750_v18  ;;  %vm510_vm3 = vcmp.eq.s32.totalorder %v1881_v27, %v1757_v20 }
  0xa7   :  { %v2077_v25 = vsel %vm529_vm7, 1.0, %v2654_v22  ;;  %vm528_vm13 = vmand %vm512_vm11, %vm2679_vm9  ;;  %vm391_vm11 = vcmp.ne.s32.totalorder %v2101_v29, %v1750_v18  ;;  %vm519_vm9 = vcmp.eq.s32.totalorder %v1958_v53, %v1757_v20 }
  0xa8   :  { %vm526_vm7 = vmand %vm510_vm3, %vm2653_vm15 }
  0xa9   :  { %v2104_v27 = vsel %vm526_vm7, 1.0, %v2654_v22  ;;  %vm389_vm7 = vcmp.ne.s32.totalorder %v2110_v33, %v1750_v18  ;;  %v918_v33 = vld [vmem:[#allocation4 + $0x60] sm:$0xff] }
  0xaa   :  { %vm525_vm15 = vmand %vm509_vm8, %vm389_vm7 }
  0xab   :  { %v2134_v37 = vsel %vm525_vm15, 1.0, %v2654_v22  ;;  %vm517_vm15 = vcmp.eq.s32.totalorder %v1898_v36, %v1757_v20  ;;  %v912_v36 = vld [vmem:[#allocation4 + $0x30] sm:$0xff] }
 0x115   :  { %v1914_v41 = vpop.f32.mrb[0].mxu0  ;;  %v1916_v42 = vpop.f32.mrb[0].mxu1 }
 0x116   :  { %v1921_v44 = vpop.f32.mrb[1].mxu0  ;;  %v1923_v45 = vpop.f32.mrb[1].mxu1  ;;  %573 = vmax.xlane.f32.xlu0 %v1914_v41  ;;  %v924_v12 = vmul.f32 %v1914_v41, %v2033_v9  ;;  %v932_v16 = vmul.f32 %v1916_v42, %v2052_v15 }
 0x117   :  { %v1926_v46 = vpop.f32.mrb[2].mxu0  ;;  %v1928_v47 = vpop.f32.mrb[2].mxu1  ;;  %v922_v21 = vmul.f32 %v1766_v23, %v1921_v44  ;;  %v930_v26 = vmul.f32 %v2077_v25, %v1923_v45  ;;  %v2091_v23 = vsel %vm528_vm13, 1.0, %v2654_v22  ;;  %vm511_vm13 = vcmp.eq.s32.totalorder %v1891_v32, %v1757_v20 }
 0x118   :  { %v1930_v48 = vpop.f32.mrb[3].mxu0  ;;  %591 = vmax.xlane.f32.xlu1 %v1928_v47  ;;  %v1933_v49 = vpop.f32.mrb[3].mxu1  ;;  %v1940_v50 = vmul.f32 %v1928_v47, %v1919_v43  ;;  %v925_v6 = vmul.f32 %v1926_v46, %v1984_v60  ;;  %vm527_vm3 = vmand %vm511_vm13, %vm391_vm11 }
 0x119   :  { %v1019_v4 = vpop.xlane.xlu0 %1018  ;;  %v923_v10 = vmul.f32 %v2028_v8, %v1930_v48  ;;  %v931_v14 = vmul.f32 %v2039_v11, %v1933_v49  ;;  %v2126_v35 = vsel %vm527_vm3, 1.0, %v2654_v22  ;;  %v2185_v22 = vld [vmem:[#allocation2 + $0x40] sm:$0xff] }
 0x11a   :  { %589 = vmax.xlane.f32.xlu0 %v1916_v42  ;;  %v1050_v7 = vadd.f32 %v1019_v4, %v1002_v63  ;;  %v2140_v63 = vld [vmem:[#allocation2 + $0x10] sm:$0xff]  ;;  %v2142_v4 = vld [vmem:[#allocation2 + $0x58] sm:$0xff]  ;;  %2698 = vst [vmem:[#allocation18_spill] sm:$0xff] %v2185_v22 }
 0x11b   :  { %2687 = vst [vmem:[#allocation7_spill] sm:$0xff] %v2140_v63  ;;  %2688 = vst [vmem:[#allocation8_spill] sm:$0xff] %v2142_v4 }
 0x11c   :  { %571 = vmax.xlane.f32.xlu1 %v1930_v48  ;;  %1066 = vst.msk [vmem:[#allocation5] sm:$0xff] %vm22_vm4, %v1050_v7 }
 0x11d   :  { %v1964_v55 = vpop.f32.mrb[4].mxu0  ;;  %v1966_v56 = vpop.f32.mrb[4].mxu1 }
 0x11e   :  { %v1971_v57 = vpop.f32.mrb[5].mxu0  ;;  %569 = vmax.xlane.f32.xlu0 %v1921_v44  ;;  %v1974_v58 = vpop.f32.mrb[5].mxu1  ;;  %v928_v32 = vmul.f32 %v1964_v55, %v2126_v35 }
 0x11f   :  { %v1986_v61 = vpop.f32.mrb[6].mxu0  ;;  %v1988_v62 = vpop.f32.mrb[6].mxu1  ;;  %v926_v39 = vmul.f32 %v2134_v37, %v1971_v57 }
 0x120   :  { %587 = vmax.xlane.f32.xlu1 %v1933_v49  ;;  %v1991_v0 = vpop.f32.mrb[7].mxu0  ;;  %v1993_v1 = vpop.f32.mrb[7].mxu1  ;;  %v929_v28 = vmul.f32 %v1986_v61, %v2091_v23 }
 0x121   :  { %v2011_v5 = vmul.f32 %v1977_v59, %v1993_v1  ;;  %v927_v31 = vmul.f32 %v2104_v27, %v1991_v0 }
 0x122   :  { %585 = vmax.xlane.f32.xlu0 %v1923_v45 }
 0x124   :  { %944 = vadd.xlane.f32.xlu1 %v925_v6 }
 0x126   :  { %575 = vmax.xlane.f32.xlu0 %v1926_v46 }
 0x128   :  { %940 = vadd.xlane.f32.xlu1 %v923_v10  ;;  %v2147_v10 = vld [vmem:[#allocation2 + $0x50] sm:$0xff] }
 0x129   :  { %2690 = vst [vmem:[#allocation10_spill] sm:$0xff] %v2147_v10 }
 0x12a   :  { %942 = vadd.xlane.f32.xlu0 %v924_v12 }
 0x12c   :  { %956 = vadd.xlane.f32.xlu1 %v931_v14 }
 0x12e   :  { %958 = vadd.xlane.f32.xlu0 %v932_v16 }
 0x130   :  { %583 = vmax.xlane.f32.xlu1 %v1986_v61 }
 0x132   :  { %938 = vadd.xlane.f32.xlu0 %v922_v21  ;;  %v2157_v21 = vld [vmem:[#allocation2 + $0x8] sm:$0xff] }
 0x133   :  { %2692 = vst [vmem:[#allocation12_spill] sm:$0xff] %v2157_v21 }
 0x134   :  { %599 = vmax.xlane.f32.xlu1 %v1988_v62 }
 0x136   :  { %954 = vadd.xlane.f32.xlu0 %v930_v26  ;;  %v2176_v26 = vld [vmem:[#allocation2 + $0x48] sm:$0xff] }
 0x137   :  { %2696 = vst [vmem:[#allocation16_spill] sm:$0xff] %v2176_v26 }
 0x138   :  { %579 = vmax.xlane.f32.xlu1 %v1991_v0 }
 0x13a   :  { %581 = vmax.xlane.f32.xlu0 %v1964_v55 }
 0x13c   :  { %595 = vmax.xlane.f32.xlu1 %v1993_v1 }
 0x13e   :  { %597 = vmax.xlane.f32.xlu0 %v1966_v56 }
 0x140   :  { %952 = vadd.xlane.f32.xlu1 %v929_v28 }
 0x142   :  { %577 = vmax.xlane.f32.xlu0 %v1971_v57 }
 0x144   :  { %948 = vadd.xlane.f32.xlu1 %v927_v31 }
 0x146   :  { %593 = vmax.xlane.f32.xlu0 %v1974_v58 }
 0x14a   :  { %950 = vadd.xlane.f32.xlu0 %v928_v32  ;;  %v2166_v32 = vld [vmem:[#allocation2] sm:$0xff] }
 0x14b   :  { %2694 = vst [vmem:[#allocation14_spill] sm:$0xff] %v2166_v32 }
 0x14e   :  { %946 = vadd.xlane.f32.xlu0 %v926_v39 }
 0x1a3   :  { %v574_v2 = vpop.xlane.xlu0 %573 }
 0x1a4   :  { %v2145_v6 = vmax.f32 %v2140_v63, %v574_v2 }
 0x1a5   :  { %v592_v7 = vpop.xlane.xlu1 %591 }
 0x1a6   :  { %2689 = vst [vmem:[#allocation9_spill] sm:$0xff] %v2145_v6  ;;  %1084 = vst.msk [vmem:[#allocation2 + $0x10] sm:$0xff] %vm22_vm4, %v2145_v6  ;;  %v2154_v14 = vmax.f32 %v2142_v4, %v592_v7  ;;  %677 = vperm.xlu1 %1517, %v2145_v6   ;;  %v908_v6 = vld [vmem:[#allocation4 + $0x10] sm:$0xff] }
 0x1a7   :  { %v590_v16 = vpop.xlane.xlu0 %589 }
 0x1a8   :  { %2691 = vst [vmem:[#allocation11_spill] sm:$0xff] %v2154_v14  ;;  %1093 = vst.msk [vmem:[#allocation2 + $0x58] sm:$0xff] %vm22_vm4, %v2154_v14  ;;  %v2164_v28 = vmax.f32 %v2147_v10, %v590_v16 }
 0x1a9   :  { %v572_v31 = vpop.xlane.xlu1 %571 }
 0x1aa   :  { %2693 = vst [vmem:[#allocation13_spill] sm:$0xff] %v2164_v28  ;;  %1092 = vst.msk [vmem:[#allocation2 + $0x50] sm:$0xff] %vm22_vm4, %v2164_v28  ;;  %v2173_v2 = vmax.f32 %v2157_v21, %v572_v31  ;;  %717 = vperm.xlu1 %1517, %v2164_v28   ;;  %v909_v21 = vld [vmem:[#allocation4 + $0x18] sm:$0xff] }
 0x1ab   :  { %v570_v7 = vpop.xlane.xlu0 %569 }
 0x1ac   :  { %2695 = vst [vmem:[#allocation15_spill] sm:$0xff] %v2173_v2  ;;  %1083 = vst.msk [vmem:[#allocation2 + $0x8] sm:$0xff] %vm22_vm4, %v2173_v2  ;;  %v2183_v12 = vmax.f32 %v2166_v32, %v570_v7  ;;  %v2202_v32 = vld [vmem:[#allocation2 + $0x18] sm:$0xff]  ;;  %v907_v7 = vld [vmem:[#allocation4 + $0x8] sm:$0xff] }
 0x1ad   :  { %v588_v39 = vpop.xlane.xlu1 %587  ;;  %2701 = vst [vmem:[#allocation21_spill] sm:$0xff] %v2202_v32 }
 0x1ae   :  { %2697 = vst [vmem:[#allocation17_spill] sm:$0xff] %v2183_v12  ;;  %1082 = vst.msk [vmem:[#allocation2] sm:$0xff] %vm22_vm4, %v2183_v12  ;;  %v2192_v4 = vmax.f32 %v2176_v26, %v588_v39  ;;  %667 = vperm.xlu0 %1516, %v2183_v12  }
 0x1af   :  { %v586_v16 = vpop.xlane.xlu0 %585 }
 0x1b0   :  { %2699 = vst [vmem:[#allocation19_spill] sm:$0xff] %v2192_v4  ;;  %1091 = vst.msk [vmem:[#allocation2 + $0x48] sm:$0xff] %vm22_vm4, %v2192_v4  ;;  %v2200_v28 = vmax.f32 %v2185_v22, %v586_v16 }
 0x1b1   :  { %v945_v31 = vpop.xlane.xlu1 %944 }
 0x1b2   :  { %2700 = vst [vmem:[#allocation20_spill] sm:$0xff] %v2200_v28  ;;  %1090 = vst.msk [vmem:[#allocation2 + $0x40] sm:$0xff] %vm22_vm4, %v2200_v28  ;;  %v973_v12 = vadd.f32 %v945_v31, %v909_v21  ;;  %707 = vperm.xlu1 %1517, %v2200_v28   ;;  %v915_v31 = vld [vmem:[#allocation4 + $0x48] sm:$0xff]  ;;  %v916_v28 = vld [vmem:[#allocation4 + $0x50] sm:$0xff] }
 0x1b3   :  { %v576_v10 = vpop.xlane.xlu0 %575 }
 0x1b4   :  { %989 = vst.msk [vmem:[#allocation4 + $0x18] sm:$0xff] %vm22_vm4, %v973_v12  ;;  %v2211_v26 = vmax.f32 %v2202_v32, %v576_v10  ;;  %v2222_v32 = vld [vmem:[#allocation2 + $0x38] sm:$0xff] }
 0x1b5   :  { %v941_v16 = vpop.xlane.xlu1 %940  ;;  %2703 = vst [vmem:[#allocation23_spill] sm:$0xff] %v2222_v32 }
 0x1b6   :  { %2702 = vst [vmem:[#allocation22_spill] sm:$0xff] %v2211_v26  ;;  %1085 = vst.msk [vmem:[#allocation2 + $0x18] sm:$0xff] %vm22_vm4, %v2211_v26  ;;  %v971_v39 = vadd.f32 %v941_v16, %v907_v7  ;;  %672 = vperm.xlu1 %1517, %v2173_v2   ;;  %682 = vperm.xlu0 %1516, %v2211_v26   ;;  %v906_v16 = vld [vmem:[#allocation4] sm:$0xff] }
 0x1b7   :  { %v943_v21 = vpop.xlane.xlu0 %942  ;;  %v2284_v26 = vld [vmem:[#allocation2 + $0x60] sm:$0xff] }
 0x1b8   :  { %987 = vst.msk [vmem:[#allocation4 + $0x8] sm:$0xff] %vm22_vm4, %v971_v39  ;;  %v972_v12 = vadd.f32 %v943_v21, %v908_v6  ;;  %v2230_v21 = vld [vmem:[#allocation2 + $0x78] sm:$0xff]  ;;  %2710 = vst [vmem:[#allocation30_spill] sm:$0xff] %v2284_v26 }
 0x1b9   :  { %v957_v10 = vpop.xlane.xlu1 %956  ;;  %2704 = vst [vmem:[#allocation24_spill] sm:$0xff] %v2230_v21 }
 0x1ba   :  { %988 = vst.msk [vmem:[#allocation4 + $0x10] sm:$0xff] %vm22_vm4, %v972_v12  ;;  %v979_v22 = vadd.f32 %v957_v10, %v915_v31  ;;  %722 = vperm.xlu0 %1516, %v2154_v14   ;;  %v914_v12 = vld [vmem:[#allocation4 + $0x40] sm:$0xff] }
 0x1bb   :  { %v959_v63 = vpop.xlane.xlu0 %958 }
 0x1bc   :  { %995 = vst.msk [vmem:[#allocation4 + $0x48] sm:$0xff] %vm22_vm4, %v979_v22  ;;  %v980_v7 = vadd.f32 %v959_v63, %v916_v28  ;;  %v2238_v28 = vld [vmem:[#allocation2 + $0x28] sm:$0xff] }
 0x1bd   :  { %v584_v2 = vpop.xlane.xlu1 %583  ;;  %2705 = vst [vmem:[#allocation25_spill] sm:$0xff] %v2238_v28 }
 0x1be   :  { %996 = vst.msk [vmem:[#allocation4 + $0x50] sm:$0xff] %vm22_vm4, %v980_v7  ;;  %712 = vperm.xlu0 %1516, %v2192_v4   ;;  %v2228_v6 = vmax.f32 %v2222_v32, %v584_v2  ;;  %v2242_v2 = vld [vmem:[#allocation2 + $0x30] sm:$0xff]  ;;  %v2270_v4 = vld [vmem:[#allocation2 + $0x20] sm:$0xff] }
 0x1bf   :  { %v939_v39 = vpop.xlane.xlu0 %938  ;;  %2706 = vst [vmem:[#allocation26_spill] sm:$0xff] %v2242_v2 }
 0x1c0   :  { %v970_v31 = vadd.f32 %v939_v39, %v906_v16  ;;  %1089 = vst.msk [vmem:[#allocation2 + $0x38] sm:$0xff] %vm22_vm4, %v2228_v6 }
 0x1c1   :  { %v600_v10 = vpop.xlane.xlu1 %599 }
 0x1c2   :  { %986 = vst.msk [vmem:[#allocation4] sm:$0xff] %vm22_vm4, %v970_v31  ;;  %v2236_v22 = vmax.f32 %v2230_v21, %v600_v10  ;;  %v2248_v31 = vld [vmem:[#allocation2 + $0x68] sm:$0xff]  ;;  %v2273_v21 = vadd.s32 96, %v1752_v19 }
 0x1c3   :  { %v955_v63 = vpop.xlane.xlu0 %954  ;;  %2707 = vst [vmem:[#allocation27_spill] sm:$0xff] %v2248_v31 }
 0x1c4   :  { %v978_v7 = vadd.f32 %v955_v63, %v914_v12  ;;  %1097 = vst.msk [vmem:[#allocation2 + $0x78] sm:$0xff] %vm22_vm4, %v2236_v22  ;;  %v2255_v12 = vld [vmem:[#allocation2 + $0x70] sm:$0xff]  ;;  %vm397_vm8 = vcmp.ne.s32.totalorder %v2273_v21, %v1750_v18  ;;  %v1003_v21 = vld [vmem:[#allocation5 + $0x8] sm:$0xff] }
 0x1c5   :  { %v580_v16 = vpop.xlane.xlu1 %579  ;;  %vm533_vm13 = vmand %vm517_vm15, %vm397_vm8 }
 0x1c6   :  { %994 = vst.msk [vmem:[#allocation4 + $0x40] sm:$0xff] %vm22_vm4, %v978_v7  ;;  %v2246_v39 = vmax.f32 %v2238_v28, %v580_v16 }
 0x1c7   :  { %v582_v32 = vpop.xlane.xlu0 %581 }
 0x1c8   :  { %v2251_v10 = vmax.f32 %v2242_v2, %v582_v32  ;;  %1087 = vst.msk [vmem:[#allocation2 + $0x28] sm:$0xff] %vm22_vm4, %v2246_v39  ;;  %v913_v32 = vld [vmem:[#allocation4 + $0x38] sm:$0xff] }
 0x1c9   :  { %v596_v63 = vpop.xlane.xlu1 %595 }
 0x1ca   :  { %2708 = vst [vmem:[#allocation28_spill] sm:$0xff] %v2251_v10  ;;  %1088 = vst.msk [vmem:[#allocation2 + $0x30] sm:$0xff] %vm22_vm4, %v2251_v10  ;;  %697 = vperm.xlu1 %1517, %v2251_v10   ;;  %v2263_v7 = vmax.f32 %v2248_v31, %v596_v63  ;;  %v911_v31 = vld [vmem:[#allocation4 + $0x28] sm:$0xff] }
 0x1cb   :  { %v598_v16 = vpop.xlane.xlu0 %597 }
 0x1cc   :  { %v2266_v28 = vmax.f32 %v2255_v12, %v598_v16  ;;  %1095 = vst.msk [vmem:[#allocation2 + $0x68] sm:$0xff] %vm22_vm4, %v2263_v7 }
 0x1cd   :  { %v953_v14 = vpop.xlane.xlu1 %952 }
 0x1ce   :  { %1096 = vst.msk [vmem:[#allocation2 + $0x70] sm:$0xff] %vm22_vm4, %v2266_v28  ;;  %737 = vperm.xlu1 %1517, %v2266_v28   ;;  %v977_v63 = vadd.f32 %v953_v14, %v913_v32 }
 0x1cf   :  { %v578_v16 = vpop.xlane.xlu0 %577 }
 0x1d0   :  { %v2281_v2 = vmax.f32 %v2270_v4, %v578_v16  ;;  %993 = vst.msk [vmem:[#allocation4 + $0x38] sm:$0xff] %vm22_vm4, %v977_v63  ;;  %v2296_v63 = vadd.s32 112, %v1752_v19 }
 0x1d1   :  { %v949_v38 = vpop.xlane.xlu1 %948 }
 0x1d2   :  { %2709 = vst [vmem:[#allocation29_spill] sm:$0xff] %v2281_v2  ;;  %1086 = vst.msk [vmem:[#allocation2 + $0x20] sm:$0xff] %vm22_vm4, %v2281_v2  ;;  %687 = vperm.xlu1 %1517, %v2281_v2   ;;  %v975_v14 = vadd.f32 %v949_v38, %v911_v31  ;;  %vm399_vm3 = vcmp.ne.s32.totalorder %v2296_v63, %v1750_v18  ;;  %v910_v2 = vld [vmem:[#allocation4 + $0x20] sm:$0xff] }
 0x1d3   :  { %v594_v32 = vpop.xlane.xlu0 %593  ;;  %vm535_vm15 = vmand %vm519_vm9, %vm399_vm3 }
 0x1d4   :  { %v2299_v16 = vmax.f32 %v2284_v26, %v594_v32  ;;  %991 = vst.msk [vmem:[#allocation4 + $0x28] sm:$0xff] %vm22_vm4, %v975_v14  ;;  %v2712_v14 = vmov 0.0  }
 0x1d5   :  { %v2315_v32 = vsel %vm533_vm13, 1.0, %v2712_v14  ;;  %v2325_v53 = vsel %vm535_vm15, 1.0, %v2712_v14  ;;  %vm520_vm13 = vcmp.eq.s32.totalorder %v2138_v30, %v1757_v20  ;;  %1358 = vst.msk [vmem:[%s2651_s4 + $0x8] sm:$0xff] %vm22_vm4, %v2712_v14  ;;  %1359 = vst.msk [vmem:[%s2651_s4 + $0x10] sm:$0xff] %vm22_vm4, %v2712_v14 }
 0x1d6   :  { %2711 = vst [vmem:[#allocation31_spill] sm:$0xff] %v2299_v16  ;;  %1094 = vst.msk [vmem:[#allocation2 + $0x60] sm:$0xff] %vm22_vm4, %v2299_v16  ;;  %727 = vperm.xlu1 %1517, %v2299_v16   ;;  %v934_v16 = vmul.f32 %v2315_v32, %v1974_v58 }
 0x1d7   :  { %v951_v38 = vpop.xlane.xlu0 %950  ;;  %1360 = vst.msk [vmem:[%s2651_s4 + $0x18] sm:$0xff] %vm22_vm4, %v2712_v14  ;;  %1361 = vst.msk [vmem:[%s2651_s4 + $0x20] sm:$0xff] %vm22_vm4, %v2712_v14 }
 0x1d8   :  { %v976_v31 = vadd.f32 %v951_v38, %v912_v36  ;;  %v936_v36 = vmul.f32 %v1966_v56, %v2325_v53  ;;  %1362 = vst.msk [vmem:[%s2651_s4 + $0x28] sm:$0xff] %vm22_vm4, %v2712_v14  ;;  %1363 = vst.msk [vmem:[%s2651_s4 + $0x30] sm:$0xff] %vm22_vm4, %v2712_v14 }
 0x1d9   :  { %1364 = vst.msk [vmem:[%s2651_s4 + $0x38] sm:$0xff] %vm22_vm4, %v2712_v14  ;;  %1365 = vst.msk [vmem:[%s2651_s4 + $0x40] sm:$0xff] %vm22_vm4, %v2712_v14 }
 0x1da   :  { %992 = vst.msk [vmem:[#allocation4 + $0x30] sm:$0xff] %vm22_vm4, %v976_v31  ;;  %1366 = vst.msk [vmem:[%s2651_s4 + $0x48] sm:$0xff] %vm22_vm4, %v2712_v14 }
 0x1db   :  { %v947_v10 = vpop.xlane.xlu0 %946  ;;  %1367 = vst.msk [vmem:[%s2651_s4 + $0x50] sm:$0xff] %vm22_vm4, %v2712_v14  ;;  %1368 = vst.msk [vmem:[%s2651_s4 + $0x58] sm:$0xff] %vm22_vm4, %v2712_v14 }
 0x1dc   :  { %v974_v26 = vadd.f32 %v947_v10, %v910_v2  ;;  %v2334_v2 = vadd.s32 120, %v1752_v19  ;;  %1369 = vst.msk [vmem:[%s2651_s4 + $0x60] sm:$0xff] %vm22_vm4, %v2712_v14  ;;  %1370 = vst.msk [vmem:[%s2651_s4 + $0x68] sm:$0xff] %vm22_vm4, %v2712_v14 }
 0x1dd   :  { %962 = vadd.xlane.f32.xlu0 %v934_v16  ;;  %1371 = vst.msk [vmem:[%s2651_s4 + $0x70] sm:$0xff] %vm22_vm4, %v2712_v14  ;;  %1372 = vst.msk [vmem:[%s2651_s4 + $0x78] sm:$0xff] %vm22_vm4, %v2712_v14 }
 0x1de   :  { %990 = vst.msk [vmem:[#allocation4 + $0x20] sm:$0xff] %vm22_vm4, %v974_v26  ;;  %vm2683_vm9 = vcmp.ne.s32.totalorder %v2334_v2, %v1750_v18 }
 0x1df   :  { %vm536_vm15 = vmand %vm520_vm13, %vm2683_vm9  ;;  %vm401_vm13 = vcmp.lt.s32.totalorder %v1750_v18, 8 }
 0x1e0   :  { %vm414_vm9 = vmand %vm395_vm12, %vm401_vm13 }
 0x1e1   :  { %966 = vadd.xlane.f32.xlu0 %v936_v36  ;;  %v430_v16 = vsel %vm414_vm9, 1.0, %v2712_v14  ;;  %vm407_vm12 = vmand %vm388_vm10, %vm401_vm13  ;;  %vm2716_vm9 = vcmp.ne.s32.totalorder %v2334_v2, %v1750_v18 }
 0x1e2   :  { %vm405_vm10 = vmand %vm386_vm0, %vm401_vm13 }
 0x1e3   :  { %vm410_vm0 = vmand %vm391_vm11, %vm401_vm13 }
 0x1e4   :  { %vm408_vm11 = vmand %vm389_vm7, %vm401_vm13  ;;  %vm2715_vm7 = vcmp.ne.s32.totalorder %v2061_v17, %v1750_v18 }
 0x1e5   :  { %1020 = vadd.xlane.f32.xlu0 %v2028_v8 }
 0x1e9   :  { %1024 = vadd.xlane.f32.xlu0 %v1984_v60  ;;  %v2346_v60 = vsel %vm536_vm15, 1.0, %v2712_v14  ;;  %vm406_vm15 = vmand %vm387_vm14, %vm401_vm13 }
 0x1ea   :  { %v937_v8 = vmul.f32 %v1988_v62, %v2346_v60  ;;  %vm404_vm14 = vmand %vm385_vm1, %vm401_vm13 }
 0x1eb   :  { %vm412_vm1 = vmand %vm393_vm2, %vm401_vm13 }
 0x1ec   :  { %vm415_vm2 = vmand %vm396_vm5, %vm401_vm13 }
 0x1ed   :  { %1028 = vadd.xlane.f32.xlu0 %v2104_v27  ;;  %vm2420_vm5 = vmand %vm394_vm6, %vm401_vm13 }
 0x1ee   :  { %vm418_vm6 = vmand %vm399_vm3, %vm401_vm13 }
 0x1ef   :  { %v434_v29 = vsel %vm418_vm6, 1.0, %v2712_v14  ;;  %vm416_vm3 = vmand %vm397_vm8, %vm401_vm13 }
 0x1f0   :  { %vm411_vm8 = vmand %vm2715_vm7, %vm401_vm13 }
 0x1f1   :  { %1032 = vadd.xlane.f32.xlu0 %v2091_v23 }
 0x1f5   :  { %1036 = vadd.xlane.f32.xlu0 %v2039_v11 }
 0x1fa   :  { %960 = vadd.xlane.f32.xlu1 %v1940_v50 }
 0x1fe   :  { %964 = vadd.xlane.f32.xlu1 %v2011_v5 }
 0x202   :  { %968 = vadd.xlane.f32.xlu1 %v937_v8 }
 0x206   :  { %1022 = vadd.xlane.f32.xlu1 %v2033_v9 }
 0x20a   :  { %1026 = vadd.xlane.f32.xlu1 %v2134_v37 }
 0x20b   :  { %702 = vperm.xlu0 %1516, %v2228_v6  }
 0x20e   :  { %1030 = vadd.xlane.f32.xlu1 %v2126_v35 }
 0x20f   :  { %742 = vperm.xlu0 %1516, %v2236_v22  }
 0x212   :  { %1034 = vadd.xlane.f32.xlu1 %v2077_v25 }
 0x213   :  { %692 = vperm.xlu0 %1516, %v2246_v39  }
 0x216   :  { %1038 = vadd.xlane.f32.xlu1 %v2052_v15 }
 0x217   :  { %732 = vperm.xlu0 %1516, %v2263_v7  }
 0x225   :  { %v678_v20 = vpop.permute.xlu1 %677 }
 0x226   :  { %v747_v50 = vsub.f32 %v1914_v41, %v678_v20 }
 0x228   :  { %v765_v5 = vmul.f32 1.442695, %v747_v50 }
 0x229   :  { %v718_v9 = vpop.permute.xlu1 %717 }
 0x22a   :  { %1526 = vpow2.f32 %v765_v5  ;;  %v755_v11 = vsub.f32 %v1916_v42, %v718_v9  ;;  %v422_v42 = vsel %vm406_vm15, 1.0, %v2712_v14  ;;  %vm419_vm15 = vmand %vm2716_vm9, %vm401_vm13 }
 0x22c   :  { %v781_v23 = vmul.f32 1.442695, %v755_v11 }
 0x22d   :  { %v668_v27 = vpop.permute.xlu0 %667 }
 0x22e   :  { %1528 = vpow2.f32 %v781_v23  ;;  %v745_v25 = vsub.f32 %v1921_v44, %v668_v27  ;;  %v431_v23 = vsel %vm415_vm2, 1.0, %v2712_v14 }
 0x230   :  { %v761_v15 = vmul.f32 1.442695, %v745_v25 }
 0x231   :  { %v708_v41 = vpop.permute.xlu1 %707 }
 0x232   :  { %1530 = vpow2.f32 %v761_v15  ;;  %v753_v35 = vsub.f32 %v1923_v45, %v708_v41  ;;  %v421_v41 = vsel %vm405_vm10, 1.0, %v2712_v14 }
 0x234   :  { %v1527_v44 = vpop.eup %1526  ;;  %v777_v37 = vmul.f32 1.442695, %v753_v35 }
 0x235   :  { %v683_v30 = vpop.permute.xlu0 %682  ;;  %v795_v26 = vmul.f32 %v1527_v44, %v422_v42  ;;  %v673_v10 = vpop.permute.xlu1 %672  ;;  %v917_v42 = vld [vmem:[#allocation4 + $0x58] sm:$0xff] }
 0x236   :  { %v748_v51 = vsub.f32 %v1926_v46, %v683_v30  ;;  %1040 = vadd.xlane.f32.xlu0 %v1919_v43  ;;  %1532 = vpow2.f32 %v777_v37  ;;  %v746_v38 = vsub.f32 %v1930_v48, %v673_v10  ;;  %v420_v43 = vsel %vm404_vm14, 1.0, %v2712_v14 }
 0x237   :  { %845 = vadd.xlane.f32.xlu1 %v795_v26  ;;  %v429_v37 = vsel %vm2420_vm5, 1.0, %v2712_v14  ;;  %vm2717_vm14 = vcmp.ne.s32.totalorder %v2070_v24, %v1750_v18 }
 0x238   :  { %v1529_v45 = vpop.eup %1528  ;;  %v767_v3 = vmul.f32 1.442695, %v748_v51  ;;  %v763_v50 = vmul.f32 1.442695, %v746_v38 }
 0x239   :  { %v723_v31 = vpop.permute.xlu0 %722  ;;  %v803_v36 = vmul.f32 %v1529_v45, %v430_v16 }
 0x23a   :  { %v756_v46 = vsub.f32 %v1928_v47, %v723_v31  ;;  %1044 = vadd.xlane.f32.xlu0 %v1977_v59  ;;  %1534 = vpow2.f32 %v767_v3  ;;  %v428_v59 = vsel %vm412_vm1, 1.0, %v2712_v14  ;;  %v426_v3 = vsel %vm410_vm0, 1.0, %v2712_v14  ;;  %vm409_vm1 = vmand %vm2717_vm14, %vm401_vm13 }
 0x23b   :  { %861 = vadd.xlane.f32.xlu1 %v803_v36 }
 0x23c   :  { %v1531_v8 = vpop.eup %1530  ;;  %v783_v20 = vmul.f32 1.442695, %v756_v46  ;;  %v424_v46 = vsel %vm408_vm11, 1.0, %v2712_v14 }
 0x23d   :  { %v713_v19 = vpop.permute.xlu0 %712  ;;  %v793_v5 = vmul.f32 %v1531_v8, %v420_v43  ;;  %v432_v8 = vsel %vm416_vm3, 1.0, %v2712_v14 }
 0x23e   :  { %1536 = vpow2.f32 %v783_v20  ;;  %v754_v9 = vsub.f32 %v1933_v49, %v713_v19  ;;  %v423_v49 = vsel %vm407_vm12, 1.0, %v2712_v14 }
 0x23f   :  { %841 = vadd.xlane.f32.xlu1 %v793_v5  ;;  %1538 = vpow2.f32 %v763_v50 }
 0x240   :  { %v779_v47 = vmul.f32 1.442695, %v754_v9  ;;  %v1533_v48 = vpop.eup %1532  ;;  %v920_v9 = vld [vmem:[#allocation4 + $0x70] sm:$0xff] }
 0x241   :  { %v801_v11 = vmul.f32 %v1533_v48, %v428_v59 }
 0x242   :  { %1540 = vpow2.f32 %v779_v47 }
 0x243   :  { %1042 = vadd.xlane.f32.xlu1 %v2315_v32 }
 0x244   :  { %v1535_v13 = vpop.eup %1534 }
 0x245   :  { %v796_v40 = vmul.f32 %v1535_v13, %v423_v49  ;;  %v1005_v13 = vld [vmem:[#allocation5 + $0x18] sm:$0xff] }
 0x247   :  { %857 = vadd.xlane.f32.xlu1 %v801_v11  ;;  %847 = vadd.xlane.f32.xlu0 %v796_v40 }
 0x248   :  { %v1537_v27 = vpop.eup %1536 }
 0x249   :  { %v698_v32 = vpop.permute.xlu1 %697  ;;  %v804_v25 = vmul.f32 %v1537_v27, %v431_v23  ;;  %v1539_v15 = vpop.eup %1538  ;;  %v1007_v23 = vld [vmem:[#allocation5 + $0x28] sm:$0xff] }
 0x24a   :  { %v751_v34 = vsub.f32 %v1964_v55, %v698_v32  ;;  %v794_v55 = vmul.f32 %v1539_v15, %v421_v41  ;;  %v1009_v32 = vld [vmem:[#allocation5 + $0x38] sm:$0xff]  ;;  %v1011_v15 = vld [vmem:[#allocation5 + $0x48] sm:$0xff] }
 0x24b   :  { %863 = vadd.xlane.f32.xlu0 %v804_v25 }
 0x24c   :  { %v773_v35 = vmul.f32 1.442695, %v751_v34  ;;  %v1541_v44 = vpop.eup %1540 }
 0x24d   :  { %v738_v52 = vpop.permute.xlu1 %737  ;;  %v802_v51 = vmul.f32 %v1541_v44, %v429_v37 }
 0x24e   :  { %1542 = vpow2.f32 %v773_v35  ;;  %v759_v54 = vsub.f32 %v1966_v56, %v738_v52 }
 0x24f   :  { %843 = vadd.xlane.f32.xlu0 %v794_v55  ;;  %v919_v55 = vld [vmem:[#allocation4 + $0x68] sm:$0xff] }
 0x250   :  { %v789_v30 = vmul.f32 1.442695, %v759_v54 }
 0x251   :  { %v688_v26 = vpop.permute.xlu1 %687 }
 0x252   :  { %1544 = vpow2.f32 %v789_v30  ;;  %v749_v10 = vsub.f32 %v1971_v57, %v688_v26 }
 0x253   :  { %859 = vadd.xlane.f32.xlu0 %v802_v51  ;;  %v921_v51 = vld [vmem:[#allocation4 + $0x78] sm:$0xff] }
 0x254   :  { %v769_v56 = vmul.f32 1.442695, %v749_v10 }
 0x255   :  { %v728_v16 = vpop.permute.xlu1 %727 }
 0x256   :  { %1546 = vpow2.f32 %v769_v56  ;;  %v757_v45 = vsub.f32 %v1974_v58, %v728_v16 }
 0x258   :  { %v1543_v57 = vpop.eup %1542  ;;  %v785_v38 = vmul.f32 1.442695, %v757_v45 }
 0x259   :  { %v799_v31 = vmul.f32 %v1543_v57, %v426_v3 }
 0x25a   :  { %1548 = vpow2.f32 %v785_v38  ;;  %v1004_v38 = vld [vmem:[#allocation5 + $0x10] sm:$0xff] }
 0x25b   :  { %853 = vadd.xlane.f32.xlu1 %v799_v31 }
 0x25c   :  { %v1545_v58 = vpop.eup %1544 }
 0x25d   :  { %v807_v36 = vmul.f32 %v1545_v58, %v434_v29 }
 0x25f   :  { %869 = vadd.xlane.f32.xlu1 %v807_v36 }
 0x260   :  { %v1547_v63 = vpop.eup %1546 }
 0x261   :  { %v797_v43 = vmul.f32 %v1547_v63, %v424_v46 }
 0x263   :  { %849 = vadd.xlane.f32.xlu1 %v797_v43 }
 0x264   :  { %v1549_v20 = vpop.eup %1548 }
 0x265   :  { %v805_v50 = vmul.f32 %v1549_v20, %v432_v8  ;;  %v427_v8 = vsel %vm411_vm8, 1.0, %v2712_v14 }
 0x267   :  { %865 = vadd.xlane.f32.xlu1 %v805_v50  ;;  %v1008_v50 = vld [vmem:[#allocation5 + $0x30] sm:$0xff] }
 0x26a   :  { %v963_v19 = vpop.xlane.xlu0 %962 }
 0x26b   :  { %v982_v5 = vadd.f32 %v963_v19, %v918_v33  ;;  %1046 = vadd.xlane.f32.xlu1 %v2325_v53 }
 0x26d   :  { %998 = vst.msk [vmem:[#allocation4 + $0x60] sm:$0xff] %vm22_vm4, %v982_v5 }
 0x26e   :  { %v967_v47 = vpop.xlane.xlu0 %966 }
 0x26f   :  { %v984_v48 = vadd.f32 %v967_v47, %v920_v9  ;;  %v1010_v9 = vld [vmem:[#allocation5 + $0x40] sm:$0xff] }
 0x271   :  { %1000 = vst.msk [vmem:[#allocation4 + $0x70] sm:$0xff] %vm22_vm4, %v984_v48 }
 0x272   :  { %v1021_v59 = vpop.xlane.xlu0 %1020 }
 0x273   :  { %v1051_v49 = vadd.f32 %v1021_v59, %v1003_v21  ;;  %v425_v21 = vsel %vm409_vm1, 1.0, %v2712_v14 }
 0x275   :  { %1067 = vst.msk [vmem:[#allocation5 + $0x8] sm:$0xff] %vm22_vm4, %v1051_v49  ;;  %v2718_v49 = vld [vmem:[#allocation6_spill] sm:$0xff] }
 0x276   :  { %v1025_v11 = vpop.xlane.xlu0 %1024  ;;  %vm2719_vm12 = vcmp.ne.s32.totalorder %v2718_v49, %v1750_v18  ;;  %v2721_v18 = vld [vmem:[#allocation9_spill] sm:$0xff] }
 0x277   :  { %v1053_v40 = vadd.f32 %v1025_v11, %v1005_v13  ;;  %vm417_vm2 = vmand %vm2719_vm12, %vm401_vm13  ;;  %v1012_v11 = vld [vmem:[#allocation5 + $0x50] sm:$0xff] }
 0x279   :  { %1069 = vst.msk [vmem:[#allocation5 + $0x18] sm:$0xff] %vm22_vm4, %v1053_v40 }
 0x27a   :  { %v1029_v27 = vpop.xlane.xlu0 %1028 }
 0x27b   :  { %v1055_v53 = vadd.f32 %v1029_v27, %v1007_v23  ;;  %v433_v23 = vsel %vm417_vm2, 1.0, %v2712_v14 }
 0x27d   :  { %1071 = vst.msk [vmem:[#allocation5 + $0x28] sm:$0xff] %vm22_vm4, %v1055_v53 }
 0x27e   :  { %v1033_v25 = vpop.xlane.xlu0 %1032 }
 0x27f   :  { %v1057_v34 = vadd.f32 %v1033_v25, %v1009_v32  ;;  %v2720_v25 = vld [vmem:[#allocation7_spill] sm:$0xff] }
 0x281   :  { %1073 = vst.msk [vmem:[#allocation5 + $0x38] sm:$0xff] %vm22_vm4, %v1057_v34  ;;  %v2722_v34 = vsub.f32 %v2720_v25, %v2721_v18  ;;  %v817_v18 = vld [vmem:[#allocation3 + $0x40] sm:$0xff] }
 0x282   :  { %v1037_v41 = vpop.xlane.xlu0 %1036 }
 0x283   :  { %v1059_v35 = vadd.f32 %v1037_v41, %v1011_v15  ;;  %v637_v15 = vmul.f32 1.442695, %v2722_v34  ;;  %v2723_v41 = vld [vmem:[#allocation10_spill] sm:$0xff] }
 0x285   :  { %1075 = vst.msk [vmem:[#allocation5 + $0x48] sm:$0xff] %vm22_vm4, %v1059_v35  ;;  %v2724_v35 = vld [vmem:[#allocation13_spill] sm:$0xff] }
 0x287   :  { %v961_v52 = vpop.xlane.xlu1 %960 }
 0x288   :  { %v981_v54 = vadd.f32 %v961_v52, %v917_v42  ;;  %v2725_v42 = vsub.f32 %v2723_v41, %v2724_v35  ;;  %v812_v41 = vld [vmem:[#allocation3 + $0x18] sm:$0xff] }
 0x28a   :  { %997 = vst.msk [vmem:[#allocation4 + $0x58] sm:$0xff] %vm22_vm4, %v981_v54  ;;  %v703_v44 = vpop.permute.xlu0 %702  ;;  %v653_v52 = vmul.f32 1.442695, %v2725_v42  ;;  %v2727_v54 = vld [vmem:[#allocation17_spill] sm:$0xff] }
 0x28b   :  { %v752_v37 = vsub.f32 %v1986_v61, %v703_v44  ;;  %v965_v30 = vpop.xlane.xlu1 %964 }
 0x28c   :  { %v983_v26 = vadd.f32 %v965_v30, %v919_v55  ;;  %v811_v30 = vld [vmem:[#allocation3 + $0x10] sm:$0xff] }
 0x28d   :  { %v775_v10 = vmul.f32 1.442695, %v752_v37 }
 0x28e   :  { %999 = vst.msk [vmem:[#allocation4 + $0x68] sm:$0xff] %vm22_vm4, %v983_v26  ;;  %v743_v56 = vpop.permute.xlu0 %742  ;;  %v1013_v26 = vld [vmem:[#allocation5 + $0x58] sm:$0xff] }
 0x28f   :  { %1550 = vpow2.f32 %v775_v10  ;;  %v760_v16 = vsub.f32 %v1988_v62, %v743_v56  ;;  %v969_v45 = vpop.xlane.xlu1 %968  ;;  %v1006_v62 = vld [vmem:[#allocation5 + $0x20] sm:$0xff] }
 0x290   :  { %v985_v3 = vadd.f32 %v969_v45, %v921_v51  ;;  %v2729_v10 = vld [vmem:[#allocation18_spill] sm:$0xff] }
 0x291   :  { %v791_v57 = vmul.f32 1.442695, %v760_v16  ;;  %v2732_v16 = vld [vmem:[#allocation21_spill] sm:$0xff]  ;;  %v2733_v45 = vld [vmem:[#allocation22_spill] sm:$0xff] }
 0x292   :  { %1001 = vst.msk [vmem:[#allocation4 + $0x78] sm:$0xff] %vm22_vm4, %v985_v3  ;;  %v693_v31 = vpop.permute.xlu0 %692  ;;  %v2734_v3 = vsub.f32 %v2732_v16, %v2733_v45 }
 0x293   :  { %1552 = vpow2.f32 %v791_v57  ;;  %v750_v61 = vsub.f32 %v1991_v0, %v693_v31  ;;  %v1023_v29 = vpop.xlane.xlu1 %1022 }
 0x294   :  { %v1052_v58 = vadd.f32 %v1023_v29, %v1004_v38  ;;  %v639_v57 = vmul.f32 1.442695, %v2734_v3  ;;  %v810_v3 = vld [vmem:[#allocation3 + $0x8] sm:$0xff] }
 0x295   :  { %v771_v36 = vmul.f32 1.442695, %v750_v61 }
 0x296   :  { %1068 = vst.msk [vmem:[#allocation5 + $0x10] sm:$0xff] %vm22_vm4, %v1052_v58  ;;  %v733_v46 = vpop.permute.xlu0 %732 }
 0x297   :  { %1554 = vpow2.f32 %v771_v36  ;;  %v758_v63 = vsub.f32 %v1993_v1, %v733_v46  ;;  %v1027_v43 = vpop.xlane.xlu1 %1026  ;;  %v435_v1 = vsel %vm419_vm15, 1.0, %v2712_v14  ;;  %v2726_v14 = vld [vmem:[#allocation14_spill] sm:$0xff]  ;;  %v819_v36 = vld [vmem:[#allocation3 + $0x50] sm:$0xff]  ;;  %v1015_v46 = vld [vmem:[#allocation5 + $0x68] sm:$0xff] }
 0x298   :  { %v1054_v0 = vadd.f32 %v1027_v43, %v1006_v62  ;;  %v2728_v55 = vsub.f32 %v2726_v14, %v2727_v54  ;;  %v2736_v43 = vld [vmem:[#allocation11_spill] sm:$0xff] }
 0x299   :  { %v1551_v17 = vpop.eup %1550  ;;  %v787_v20 = vmul.f32 1.442695, %v758_v63  ;;  %v2735_v63 = vld [vmem:[#allocation8_spill] sm:$0xff] }
 0x29a   :  { %1070 = vst.msk [vmem:[#allocation5 + $0x20] sm:$0xff] %vm22_vm4, %v1054_v0  ;;  %v800_v33 = vmul.f32 %v1551_v17, %v427_v8  ;;  %v633_v44 = vmul.f32 1.442695, %v2728_v55  ;;  %v2737_v8 = vsub.f32 %v2735_v63, %v2736_v43  ;;  %v818_v63 = vld [vmem:[#allocation3 + $0x48] sm:$0xff]  ;;  %v2748_v43 = vld [vmem:[#allocation29_spill] sm:$0xff] }
 0x29b   :  { %1556 = vpow2.f32 %v787_v20  ;;  %v1031_v19 = vpop.xlane.xlu1 %1030 }
 0x29c   :  { %v1056_v5 = vadd.f32 %v1031_v19, %v1008_v50  ;;  %855 = vadd.xlane.f32.xlu0 %v800_v33  ;;  %1558 = vpow2.f32 %v637_v15  ;;  %v655_v0 = vmul.f32 1.442695, %v2737_v8  ;;  %v2749_v8 = vsub.f32 %v2270_v4, %v2748_v43  ;;  %v815_v4 = vld [vmem:[#allocation3 + $0x30] sm:$0xff]  ;;  %v814_v43 = vld [vmem:[#allocation3 + $0x28] sm:$0xff] }
 0x29d   :  { %v1553_v2 = vpop.eup %1552  ;;  %1560 = vpow2.f32 %v653_v52 }
 0x29e   :  { %1072 = vst.msk [vmem:[#allocation5 + $0x30] sm:$0xff] %vm22_vm4, %v1056_v5  ;;  %v808_v47 = vmul.f32 %v1553_v2, %v435_v1  ;;  %1562 = vpow2.f32 %v633_v44  ;;  %v809_v1 = vld [vmem:[#allocation3] sm:$0xff]  ;;  %v820_v44 = vld [vmem:[#allocation3 + $0x58] sm:$0xff] }
 0x29f   :  { %v1035_v48 = vpop.xlane.xlu1 %1034  ;;  %v2595_v2 = vld [vmem:[#allocation5] sm:$0xff] }
 0x2a0   :  { %v1058_v59 = vadd.f32 %v1035_v48, %v1010_v9  ;;  %871 = vadd.xlane.f32.xlu0 %v808_v47  ;;  %v2738_v9 = vld [vmem:[#allocation12_spill] sm:$0xff]  ;;  %v2739_v47 = vld [vmem:[#allocation15_spill] sm:$0xff]  ;;  %vm1309_vm13 = vcmp.gt.f32.partialorder %v2595_v2, 0.0 }
 0x2a1   :  { %v1555_v13 = vpop.eup %1554  ;;  %v2740_v48 = vsub.f32 %v2738_v9, %v2739_v47 }
 0x2a2   :  { %1074 = vst.msk [vmem:[#allocation5 + $0x40] sm:$0xff] %vm22_vm4, %v1058_v59  ;;  %v798_v24 = vmul.f32 %v1555_v13, %v425_v21 }
 0x2a3   :  { %v1039_v40 = vpop.xlane.xlu1 %1038  ;;  %v635_v21 = vmul.f32 1.442695, %v2740_v48 }
 0x2a4   :  { %v1060_v27 = vadd.f32 %v1039_v40, %v1012_v11  ;;  %851 = vadd.xlane.f32.xlu0 %v798_v24  ;;  %v1117_v11 = vmax.f32 %v2595_v2, 1.0  ;;  %v1014_v24 = vld [vmem:[#allocation5 + $0x60] sm:$0xff]  ;;  %v2741_v40 = vld [vmem:[#allocation16_spill] sm:$0xff] }
 0x2a5   :  { %v1557_v53 = vpop.eup %1556 }
 0x2a6   :  { %1076 = vst.msk [vmem:[#allocation5 + $0x50] sm:$0xff] %vm22_vm4, %v1060_v27  ;;  %v806_v32 = vmul.f32 %v1557_v53, %v433_v23  ;;  %v1559_v37 = vpop.eup %1558  ;;  %v2742_v23 = vld [vmem:[#allocation19_spill] sm:$0xff] }
 0x2a7   :  { %v827_v31 = vmul.f32 %v1559_v37, %v811_v30  ;;  %v1561_v61 = vpop.eup %1560  ;;  %v2743_v27 = vsub.f32 %v2741_v40, %v2742_v23  ;;  %v2744_v37 = vld [vmem:[#allocation26_spill] sm:$0xff]  ;;  %v2745_v30 = vld [vmem:[#allocation28_spill] sm:$0xff] }
 0x2a8   :  { %867 = vadd.xlane.f32.xlu0 %v806_v32  ;;  %v835_v20 = vmul.f32 %v1561_v61, %v819_v36  ;;  %v1563_v50 = vpop.eup %1562  ;;  %v823_v23 = vld [vmem:[#allocation3 + $0x70] sm:$0xff] }
 0x2a9   :  { %v825_v59 = vmul.f32 %v1563_v50, %v809_v1  ;;  %v651_v53 = vmul.f32 1.442695, %v2743_v27  ;;  %v2751_v1 = vld [vmem:[#allocation31_spill] sm:$0xff] }
 0x2ac   :  { %1048 = vadd.xlane.f32.xlu0 %v2346_v60  ;;  %v2730_v60 = vld [vmem:[#allocation20_spill] sm:$0xff] }
 0x2ad   :  { %v2731_v51 = vsub.f32 %v2729_v10, %v2730_v60 }
 0x2af   :  { %v649_v56 = vmul.f32 1.442695, %v2731_v51 }
 0x2b1   :  { %1564 = vpow2.f32 %v649_v56 }
 0x2b2   :  { %1566 = vpow2.f32 %v639_v57  ;;  %v1149_v57 = vld [vmem:[#allocation4] sm:$0xff] }
 0x2b3   :  { %1568 = vpow2.f32 %v655_v0  ;;  %v641_v0 = vmul.f32 1.442695, %v2749_v8 }
 0x2b4   :  { %1570 = vpow2.f32 %v635_v21 }
 0x2b5   :  { %1572 = vrcp.f32 %v1117_v11 }
 0x2b6   :  { %1574 = vpow2.f32 %v651_v53 }
 0x2bb   :  { %v1565_v32 = vpop.eup %1564 }
 0x2bc   :  { %v1567_v34 = vpop.eup %1566  ;;  %v833_v35 = vmul.f32 %v1565_v32, %v817_v18  ;;  %v813_v18 = vld [vmem:[#allocation3 + $0x20] sm:$0xff] }
 0x2bd   :  { %v828_v52 = vmul.f32 %v1567_v34, %v812_v41  ;;  %v1569_v14 = vpop.eup %1568 }
 0x2be   :  { %v836_v56 = vmul.f32 %v1569_v14, %v820_v44  ;;  %v1571_v16 = vpop.eup %1570 }
 0x2c3   :  { %v1041_v38 = vpop.xlane.xlu0 %1040 }
 0x2c4   :  { %v1061_v29 = vadd.f32 %v1041_v38, %v1013_v26  ;;  %v846_v58 = vpop.xlane.xlu1 %845  ;;  %v2746_v26 = vsub.f32 %v2744_v37, %v2745_v30  ;;  %v2747_v38 = vsub.f32 %v2255_v12, %v2266_v28  ;;  %v2753_v30 = vld [vmem:[#allocation23_spill] sm:$0xff] }
 0x2c5   :  { %v875_v62 = vadd.f32 %v846_v58, %v827_v31  ;;  %v826_v58 = vmul.f32 %v1571_v16, %v810_v3  ;;  %v2755_v16 = vld [vmem:[#allocation25_spill] sm:$0xff] }
 0x2c6   :  { %1077 = vst.msk [vmem:[#allocation5 + $0x58] sm:$0xff] %vm22_vm4, %v1061_v29  ;;  %v645_v10 = vmul.f32 1.442695, %v2746_v26  ;;  %v661_v31 = vmul.f32 1.442695, %v2747_v38  ;;  %v1573_v29 = vpop.eup %1572  ;;  %v624_v26 = vsub.f32 %v2753_v30, %v2228_v6 }
 0x2c7   :  { %892 = vst.msk [vmem:[#allocation3 + $0x10] sm:$0xff] %vm22_vm4, %v875_v62  ;;  %v1045_v17 = vpop.xlane.xlu0 %1044  ;;  %v1575_v36 = vpop.eup %1574  ;;  %v1165_v62 = vmul.f32 %v1573_v29, %v1149_v57  ;;  %v2756_v57 = vld [vmem:[#allocation27_spill] sm:$0xff]  ;;  %v816_v29 = vld [vmem:[#allocation3 + $0x38] sm:$0xff] }
 0x2c8   :  { %v1063_v33 = vadd.f32 %v1045_v17, %v1015_v46  ;;  %v862_v19 = vpop.xlane.xlu1 %861  ;;  %v834_v28 = vmul.f32 %v1575_v36, %v818_v63  ;;  %v630_v38 = vsub.f32 %v2756_v57, %v2263_v7 }
 0x2c9   :  { %v883_v5 = vadd.f32 %v862_v19, %v835_v20  ;;  %v1181_v20 = vld [vmem:[#allocation2] sm:$0xff] }
 0x2ca   :  { %1079 = vst.msk [vmem:[#allocation5 + $0x68] sm:$0xff] %vm22_vm4, %v1063_v33  ;;  %v1197_v50 = vsub.f32 %v1165_v62, %v1181_v20  ;;  %v2750_v19 = vld [vmem:[#allocation30_spill] sm:$0xff]  ;;  %v824_v62 = vld [vmem:[#allocation3 + $0x78] sm:$0xff]  ;;  %v822_v20 = vld [vmem:[#allocation3 + $0x68] sm:$0xff] }
 0x2cb   :  { %900 = vst.msk [vmem:[#allocation3 + $0x50] sm:$0xff] %vm22_vm4, %v883_v5  ;;  %v2752_v5 = vsub.f32 %v2750_v19, %v2751_v1  ;;  %v1017_v19 = vld [vmem:[#allocation5 + $0x78] sm:$0xff] }
 0x2cc   :  { %v842_v49 = vpop.xlane.xlu1 %841 }
 0x2cd   :  { %v873_v13 = vadd.f32 %v842_v49, %v825_v59  ;;  %v657_v9 = vmul.f32 1.442695, %v2752_v5 }
 0x2cf   :  { %890 = vst.msk [vmem:[#allocation3] sm:$0xff] %vm22_vm4, %v873_v13 }
 0x2d0   :  { %v1043_v25 = vpop.xlane.xlu1 %1042 }
 0x2d1   :  { %v1062_v15 = vadd.f32 %v1043_v25, %v1014_v24 }
 0x2d3   :  { %1078 = vst.msk [vmem:[#allocation5 + $0x60] sm:$0xff] %vm22_vm4, %v1062_v15 }
 0x2d4   :  { %v858_v42 = vpop.xlane.xlu1 %857  ;;  %v848_v55 = vpop.xlane.xlu0 %847 }
 0x2d5   :  { %v881_v54 = vadd.f32 %v858_v42, %v833_v35  ;;  %v876_v51 = vadd.f32 %v848_v55, %v828_v52  ;;  %v821_v35 = vld [vmem:[#allocation3 + $0x60] sm:$0xff]  ;;  %v1016_v55 = vld [vmem:[#allocation5 + $0x70] sm:$0xff] }
 0x2d6   :  { %v1213_v60 = vld [vmem:[#allocation3] sm:$0xff] }
 0x2d7   :  { %1576 = vlog2.f32 %v1213_v60  ;;  %898 = vst.msk [vmem:[#allocation3 + $0x40] sm:$0xff] %vm22_vm4, %v881_v54  ;;  %893 = vst.msk [vmem:[#allocation3 + $0x18] sm:$0xff] %vm22_vm4, %v876_v51  ;;  %v2754_v60 = vld [vmem:[#allocation24_spill] sm:$0xff] }
 0x2d8   :  { %v864_v45 = vpop.xlane.xlu0 %863  ;;  %1578 = vpow2.f32 %v645_v10  ;;  %v647_v10 = vmul.f32 1.442695, %v624_v26  ;;  %v632_v51 = vsub.f32 %v2754_v60, %v2236_v22 }
 0x2d9   :  { %v884_v61 = vadd.f32 %v864_v45, %v836_v56  ;;  %1580 = vpow2.f32 %v661_v31  ;;  %v622_v45 = vsub.f32 %v2755_v16, %v2246_v39  ;;  %v659_v31 = vmul.f32 1.442695, %v630_v38 }
 0x2da   :  { %1582 = vpow2.f32 %v641_v0  ;;  %v663_v56 = vmul.f32 1.442695, %v632_v51 }
 0x2db   :  { %901 = vst.msk [vmem:[#allocation3 + $0x58] sm:$0xff] %vm22_vm4, %v884_v61  ;;  %1584 = vpow2.f32 %v657_v9  ;;  %v643_v3 = vmul.f32 1.442695, %v622_v45 }
 0x2dc   :  { %v844_v46 = vpop.xlane.xlu0 %843  ;;  %1586 = vpow2.f32 %v647_v10 }
 0x2dd   :  { %v874_v17 = vadd.f32 %v844_v46, %v826_v58  ;;  %1588 = vpow2.f32 %v663_v56 }
 0x2de   :  { %1590 = vpow2.f32 %v643_v3 }
 0x2df   :  { %891 = vst.msk [vmem:[#allocation3 + $0x8] sm:$0xff] %vm22_vm4, %v874_v17  ;;  %1592 = vpow2.f32 %v659_v31 }
 0x2e0   :  { %v860_v33 = vpop.xlane.xlu0 %859 }
 0x2e1   :  { %v1577_v12 = vpop.eup %1576  ;;  %v882_v48 = vadd.f32 %v860_v33, %v834_v28 }
 0x2e2   :  { %v1230_v47 = vmul.f32 0.6931472, %v1577_v12  ;;  %v1579_v21 = vpop.eup %1578 }
 0x2e3   :  { %899 = vst.msk [vmem:[#allocation3 + $0x48] sm:$0xff] %vm22_vm4, %v882_v48  ;;  %v831_v13 = vmul.f32 %v1579_v21, %v815_v4  ;;  %v1581_v11 = vpop.eup %1580 }
 0x2e4   :  { %v1261_v59 = vsub.f32 %v1197_v50, %v1230_v47  ;;  %v839_v53 = vmul.f32 %v1581_v11, %v823_v23  ;;  %v1583_v32 = vpop.eup %1582 }
 0x2e5   :  { %v829_v2 = vmul.f32 %v1583_v32, %v813_v18  ;;  %v1585_v15 = vpop.eup %1584 }
 0x2e6   :  { %v1277_v49 = vmul.f32 -1.0, %v1261_v59  ;;  %v837_v52 = vmul.f32 %v1585_v15, %v821_v35  ;;  %v1587_v61 = vpop.eup %1586 }
 0x2e7   :  { %v832_v6 = vmul.f32 %v1587_v61, %v816_v29  ;;  %v1589_v58 = vpop.eup %1588 }
 0x2e8   :  { %v1341_v24 = vsel %vm1309_vm13, %v1277_v49, 0.0  ;;  %v854_v40 = vpop.xlane.xlu1 %853  ;;  %v840_v46 = vmul.f32 %v1589_v58, %v824_v62  ;;  %v1591_v63 = vpop.eup %1590 }
 0x2e9   :  { %1357 = vst.msk [vmem:[%s2651_s4] sm:$0xff] %vm22_vm4, %v1341_v24  ;;  %v879_v27 = vadd.f32 %v854_v40, %v831_v13  ;;  %v830_v7 = vmul.f32 %v1591_v63, %v814_v43  ;;  %v1593_v0 = vpop.eup %1592 }
 0x2ea   :  { %v838_v12 = vmul.f32 %v1593_v0, %v822_v20 }
 0x2eb   :  { %896 = vst.msk [vmem:[#allocation3 + $0x30] sm:$0xff] %vm22_vm4, %v879_v27 }
 0x2ec   :  { %v870_v25 = vpop.xlane.xlu1 %869 }
 0x2ed   :  { %v887_v34 = vadd.f32 %v870_v25, %v839_v53 }
 0x2ef   :  { %904 = vst.msk [vmem:[#allocation3 + $0x70] sm:$0xff] %vm22_vm4, %v887_v34 }
 0x2f0   :  { %v850_v41 = vpop.xlane.xlu1 %849 }
 0x2f1   :  { %v877_v42 = vadd.f32 %v850_v41, %v829_v2 }
 0x2f3   :  { %894 = vst.msk [vmem:[#allocation3 + $0x20] sm:$0xff] %vm22_vm4, %v877_v42 }
 0x2f4   :  { %v866_v14 = vpop.xlane.xlu1 %865 }
 0x2f5   :  { %v885_v54 = vadd.f32 %v866_v14, %v837_v52 }
 0x2f7   :  { %902 = vst.msk [vmem:[#allocation3 + $0x60] sm:$0xff] %vm22_vm4, %v885_v54 }
 0x2f8   :  { %v1047_v44 = vpop.xlane.xlu1 %1046 }
 0x2f9   :  { %v1064_v37 = vadd.f32 %v1047_v44, %v1016_v55 }
 0x2fb   :  { %1080 = vst.msk [vmem:[#allocation5 + $0x70] sm:$0xff] %vm22_vm4, %v1064_v37 }
 0x329   :  { %v856_v36 = vpop.xlane.xlu0 %855 }
 0x32a   :  { %v880_v22 = vadd.f32 %v856_v36, %v832_v6 }
 0x32c   :  { %897 = vst.msk [vmem:[#allocation3 + $0x38] sm:$0xff] %vm22_vm4, %v880_v22 }
 0x32d   :  { %v872_v39 = vpop.xlane.xlu0 %871 }
 0x32e   :  { %v888_v8 = vadd.f32 %v872_v39, %v840_v46 }
 0x330   :  { %905 = vst.msk [vmem:[#allocation3 + $0x78] sm:$0xff] %vm22_vm4, %v888_v8 }
 0x331   :  { %v852_v17 = vpop.xlane.xlu0 %851 }
 0x332   :  { %v878_v28 = vadd.f32 %v852_v17, %v830_v7 }
 0x334   :  { %895 = vst.msk [vmem:[#allocation3 + $0x28] sm:$0xff] %vm22_vm4, %v878_v28 }
 0x335   :  { %v868_v50 = vpop.xlane.xlu0 %867 }
 0x336   :  { %v886_v33 = vadd.f32 %v868_v50, %v838_v12 }
 0x338   :  { %903 = vst.msk [vmem:[#allocation3 + $0x68] sm:$0xff] %vm22_vm4, %v886_v33 }
 0x339   :  { %v1049_v1 = vpop.xlane.xlu0 %1048 }
 0x33a   :  { %v1065_v5 = vadd.f32 %v1049_v1, %v1017_v19 }
 0x33c   :  { %1081 = vst.msk [vmem:[#allocation5 + $0x78] sm:$0xff] %vm22_vm4, %v1065_v5 }

</bundles_post_ra>
